<compile_context>
chip_gen: v6e
topology: v6e:2x2x1
jax: 0.10.0
libtpu: 0.0.40
codegen_flags: <defaults>
</compile_context>

<pallas_src>
import functools

import jax
import jax.numpy as jnp
from jax.experimental import pallas as pl
from jax.experimental.pallas import tpu as pltpu

EPS = 1e-6
NEG_SLOPE_VN = 0.01    # VNLeakyReLU default
NEG_SLOPE_SCA = 0.01   # nn.LeakyReLU() default
LANE = 128


def _round_up(x, m):
    return (x + m - 1) // m * m


def _gv_perceptron_kernel(xr_ref, xi_ref, wr_ref, wi_ref, ws_ref, wg_ref, bg_ref,
                          wd_ref, out_vec_ref, out_sca_ref, *, bt, n, hp, vp, sp):
    """Fused GVP-complex pipeline over a (Bt, 3, N, .) batch tile.

    Block shapes (per grid step b):
      xr_ref/xi_ref : (Bt, 3, N, Cin)      real / imag inputs (no wrapper concat)
      wr_ref        : (Cin, Hp+Vp)         [W_R | W_R @ W_V2], zero-padded to 128 lanes
      wi_ref        : (Cin, Hp+Vp)         [W_I | W_I @ W_V2], zero-padded
      ws_ref        : (4, Hp, Sp)          lin_scalar row blocks (norm, real x/y/z), padded
      wg_ref        : (Sp, Vp)             gate weight, pre-scaled by out_scalar**-0.5
      bg_ref        : (1, Vp)              gate bias, pre-scaled (kept f32)
      wd_ref        : (Vp, Vp)             VNLeakyReLU.map_to_dir, padded
      out_vec_ref   : (Bt, 3, N, Vp)       padded -> fully lane-dense stores
      out_sca_ref   : (Bt, N, Sp)          padded -> fully lane-dense stores
    """
    Bt, N, Hp, Vp, Sp = bt, n, hp, vp, sp
    cin = xr_ref.shape[-1]
    M3 = Bt * 3 * N
    M = Bt * N
    f32 = jnp.float32
    mm = ws_ref.dtype                      # MXU operand dtype for downstream matmuls

    # ---- ComplexLinear + lin_vector2 fused: two tall (M3, Cin) @ (Cin, Hp+Vp) matmuls ----
    xr = xr_ref[...].reshape(M3, cin)
    xi = xi_ref[...].reshape(M3, cin)
    A = jnp.dot(xr, wr_ref[...], preferred_element_type=f32)   # [xr@Wr | xr@Wr@Wv2]
    C = jnp.dot(xi, wi_ref[...], preferred_element_type=f32)   # [xi@Wi | xi@Wi@Wv2]
    a, av = A[:, :Hp], A[:, Hp:]                               # 128-aligned lane splits
    b, bv = C[:, :Hp], C[:, Hp:]
    h_r = (a - b).reshape(Bt, 3, N, Hp)                        # real hidden
    h_i = (a + b).reshape(Bt, 3, N, Hp)                        # imag hidden
    v = (av + bv).reshape(Bt, 3, N, Vp)                        # lin_vector2(imag hidden)

    # ---- ||imag||_2 over the 3 vector coordinates ----
    norm_i = jnp.sqrt(h_i[:, 0] * h_i[:, 0] + h_i[:, 1] * h_i[:, 1]
                      + h_i[:, 2] * h_i[:, 2])                 # (Bt, N, Hp)

    # ---- scalar branch: lin_scalar(cat([norm_i, flatten(real)], -1)), bias=False ----
    out_sca = jnp.dot(norm_i.reshape(M, Hp).astype(mm), ws_ref[0],
                      preferred_element_type=f32)              # (M, Sp)
    for d in range(3):
        out_sca = out_sca + jnp.dot(h_r[:, d].reshape(M, Hp).astype(mm),
                                    ws_ref[d + 1], preferred_element_type=f32)

    # ---- gating: softmax over the N axis (out_scalar**-0.5 pre-folded into wg/bg) ----
    logits = (jnp.dot(out_sca.astype(mm), wg_ref[...], preferred_element_type=f32)
              + bg_ref[...]).reshape(Bt, N, Vp)
    mx = jnp.max(logits, axis=1, keepdims=True)
    e = jnp.exp(logits - mx)
    g = e * pl.reciprocal(jnp.sum(e, axis=1, keepdims=True), approx=True)   # (Bt, N, Vp)
    gv = v * g[:, None, :, :]                                               # (Bt, 3, N, Vp)

    # ---- VNLeakyReLU (algebraic form): out = gv - 1{dot<0}·(1-s)·dot/(|d|^2+eps)·d ----
    dvec = jnp.dot(gv.reshape(M3, Vp).astype(mm), wd_ref[...],
                   preferred_element_type=f32).reshape(Bt, 3, N, Vp)
    pd = gv * dvec
    dot = pd[:, 0] + pd[:, 1] + pd[:, 2]                                    # (Bt, N, Vp)
    dsq = dvec * dvec
    dns = dsq[:, 0] + dsq[:, 1] + dsq[:, 2]
    proj = dot * pl.reciprocal(dns + EPS, approx=True)
    coef = jnp.where(dot < 0.0, (1.0 - NEG_SLOPE_VN) * proj, 0.0)
    out_vec_ref[...] = gv - coef[:, None, :, :] * dvec          # unmasked whole-block store

    # ---- plain LeakyReLU on the scalar output ----
    out_sca_ref[...] = jnp.where(out_sca >= 0.0, out_sca,
                                 NEG_SLOPE_SCA * out_sca).reshape(Bt, N, Sp)


def _choose_batch_tile(B, N, cin, hp, vp, sp, *, vmem_budget_bytes=24 << 20, min_grid=2):
    """Largest divisor of B whose per-step VMEM footprint fits the budget, with >=2 grid
    steps so v7x's 2 TensorCores both get work.  Budget is v7x-safe (64 MiB physical /
    32 MiB default scoped); v5e/v6e (128 MiB) can pass batch_tile / budgets explicitly."""
    io_b = 4 * (2 * 3 * N * cin + 3 * N * vp + N * sp)          # f32 input/output bytes
    # Live f32 intermediates per batch element (A/C, h_r/h_i, v, gv, dvec, out_vec slabs
    # plus the (N, .) norm/scalar/gate/dot slabs), counted explicitly.
    inter_b = 4 * (3 * N * (2 * (hp + vp) + 2 * hp + 4 * vp)
                   + N * (hp + sp + 6 * vp))
    per_b = 2 * io_b + inter_b                                   # 2x: pipeline double-buffer
    bt = int(max(1, min(B, vmem_budget_bytes // max(per_b, 1))))
    if B >= min_grid:
        bt = min(bt, max(1, B // min_grid))
    while B % bt:
        bt -= 1
    return bt


def complex_gv_perceptron_vn(x_real, x_imag, params, *, in_scalar, in_vector,
                             out_scalar, out_vector, batch_tile=None,
                             mxu_dtype=jnp.float32, vmem_limit_bytes=32 << 20):
    """x_real, x_imag: [B, 3, N, in_vector].  Returns (out_vec [B,3,N,Vout], out_sca [B,N,Sout])."""
    B, three, N, cin = x_real.shape
    assert three == 3 and cin == in_vector and x_imag.shape == x_real.shape
    assert N % 8 == 0, "N must be a multiple of 8 for layout-free sublane folds"
    H = max(in_vector, out_vector)
    assert in_scalar == 3 * H, "cat/flatten interpretation requires in_scalar == 3*dim_hid"

    Hp = _round_up(H, LANE)
    Vp = _round_up(out_vector, LANE)
    Sp = _round_up(out_scalar, LANE)

    def pad2(w, r, c):
        return jnp.zeros((r, c), w.dtype).at[:w.shape[0], :w.shape[1]].set(w)

    Wr, Wi, Wv2 = params["W_R"], params["W_I"], params["W_V2"]
    Ws, Wg, bG, Wd = params["W_S"], params["W_G"], params["b_G"], params["W_D"]

    # Precompose W_V2 into the first matmul and zero-pad all channel dims to 128 lanes.
    wr_ext = jnp.concatenate([pad2(Wr, in_vector, Hp), pad2(Wr @ Wv2, in_vector, Vp)], axis=1)
    wi_ext = jnp.concatenate([pad2(Wi, in_vector, Hp), pad2(Wi @ Wv2, in_vector, Vp)], axis=1)
    ws_stk = jnp.stack([pad2(Ws[k * H:(k + 1) * H], Hp, Sp) for k in range(4)], axis=0)
    scale = out_scalar ** (-0.5)                      # fold the softmax scale into gate params
    wg_p = pad2(Wg * scale, Sp, Vp)
    bg_p = pad2(bG * scale, 1, Vp)
    wd_p = pad2(Wd, Vp, Vp)

    if mxu_dtype != jnp.float32:
        # bf16 MXU operands for all matmuls (recommended on v5e/v6e/v7x); accumulation and
        # the elementwise epilogue stay f32.  Expect ~1e-2 relative drift vs f32.
        x_real, x_imag = x_real.astype(mxu_dtype), x_imag.astype(mxu_dtype)
        wr_ext, wi_ext = wr_ext.astype(mxu_dtype), wi_ext.astype(mxu_dtype)
        ws_stk, wg_p, wd_p = (ws_stk.astype(mxu_dtype), wg_p.astype(mxu_dtype),
                              wd_p.astype(mxu_dtype))

    Bt = batch_tile if batch_tile is not None else _choose_batch_tile(
        B, N, in_vector, Hp, Vp, Sp)
    assert B % Bt == 0
    grid = (B // Bt,)

    kernel = functools.partial(_gv_perceptron_kernel, bt=Bt, n=N, hp=Hp, vp=Vp, sp=Sp)

    in_specs = [
        pl.BlockSpec((Bt, 3, N, in_vector), lambda b: (b, 0, 0, 0)),   # x_real
        pl.BlockSpec((Bt, 3, N, in_vector), lambda b: (b, 0, 0, 0)),   # x_imag
        pl.BlockSpec((in_vector, Hp + Vp), lambda b: (0, 0)),          # [W_R | W_R@W_V2]
        pl.BlockSpec((in_vector, Hp + Vp), lambda b: (0, 0)),          # [W_I | W_I@W_V2]
        pl.BlockSpec((4, Hp, Sp), lambda b: (0, 0, 0)),                # lin_scalar blocks
        pl.BlockSpec((Sp, Vp), lambda b: (0, 0)),                      # gate weight (scaled)
        pl.BlockSpec((1, Vp), lambda b: (0, 0)),                       # gate bias (scaled)
        pl.BlockSpec((Vp, Vp), lambda b: (0, 0)),                      # map_to_dir
    ]
    out_specs = [
        pl.BlockSpec((Bt, 3, N, Vp), lambda b: (b, 0, 0, 0)),          # VN-activated vectors
        pl.BlockSpec((Bt, N, Sp), lambda b: (b, 0, 0)),                # LeakyReLU'd scalars
    ]
    out_shape = [
        jax.ShapeDtypeStruct((B, 3, N, Vp), jnp.float32),
        jax.ShapeDtypeStruct((B, N, Sp), jnp.float32),
    ]

    out_vec_p, out_sca_p = pl.pallas_call(
        kernel,
        grid=grid,
        in_specs=in_specs,
        out_specs=out_specs,
        out_shape=out_shape,
        compiler_params=pltpu.CompilerParams(
            dimension_semantics=("parallel",),     # shards batch steps across v7x's 2 TCs
            vmem_limit_bytes=vmem_limit_bytes),
    )(x_real, x_imag, wr_ext, wi_ext, ws_stk, wg_p, bg_p, wd_p)

    # Slice the lane-padded slabs back to the external channel widths.
    return out_vec_p[..., :out_vector], out_sca_p[..., :out_scalar]


def init_params(key, in_scalar, in_vector, out_scalar, out_vector):
    """Deterministic synthetic params (PyTorch Linear-style uniform init, stored [in, out])."""
    H = max(in_vector, out_vector)
    ks = jax.random.split(key, 7)

    def lin_w(k, fan_in, fan_out):
        bound = 1.0 / (fan_in ** 0.5)
        return jax.random.uniform(k, (fan_in, fan_out), jnp.float32, -bound, bound)

    return dict(
        W_R=lin_w(ks[0], in_vector, H),                 # ComplexLinear.FC_R (bias=False)
        W_I=lin_w(ks[1], in_vector, H),                 # ComplexLinear.FC_I / VNLinear (bias=False)
        W_V2=lin_w(ks[2], H, out_vector),               # lin_vector2 (bias=False)
        W_S=lin_w(ks[3], in_scalar + H, out_scalar),    # lin_scalar (bias=False)
        W_G=lin_w(ks[4], out_scalar, out_vector),       # scalar_to_vector_gates weight
        b_G=jax.random.uniform(ks[5], (1, out_vector), jnp.float32,
                               -1.0 / (out_scalar ** 0.5), 1.0 / (out_scalar ** 0.5)),
        W_D=lin_w(ks[6], out_vector, out_vector),       # act_vec.map_to_dir (bias=False)
    )


def _reference(x_real, x_imag, params, *, out_scalar):
    """Pure-JAX reference of the same accepted semantics (f32, exact reciprocals)."""
    Wr, Wi, Wv2 = params["W_R"], params["W_I"], params["W_V2"]
    Ws, Wg, bG, Wd = params["W_S"], params["W_G"], params["b_G"], params["W_D"]
    xr_w = jnp.einsum('bcnk,kh->bcnh', x_real, Wr)
    xi_w = jnp.einsum('bcnk,kh->bcnh', x_imag, Wi)
    h_r, h_i = xr_w - xi_w, xr_w + xi_w
    norm_i = jnp.sqrt(jnp.sum(h_i * h_i, axis=1))                       # (B, N, H)
    feat = jnp.concatenate([norm_i, h_r[:, 0], h_r[:, 1], h_r[:, 2]], axis=-1)
    out_sca = feat @ Ws                                                 # (B, N, S)
    v = jnp.einsum('bcnh,hv->bcnv', h_i, Wv2)
    logits = (out_sca @ Wg + bG) * (out_scalar ** -0.5)
    g = jax.nn.softmax(logits, axis=1)
    gv = v * g[:, None, :, :]
    d = jnp.einsum('bcnv,vw->bcnw', gv, Wd)
    dot = jnp.sum(gv * d, axis=1)
    dns = jnp.sum(d * d, axis=1)
    proj = dot / (dns + EPS)
    out_vec = gv - jnp.where(dot < 0, (1.0 - NEG_SLOPE_VN) * proj, 0.0)[:, None] * d
    out_sca = jnp.where(out_sca >= 0, out_sca, NEG_SLOPE_SCA * out_sca)
    return out_vec, out_sca


if __name__ == "__main__":
    B, N = 2, 8
    in_vector, out_vector = 8, 8
    H = max(in_vector, out_vector)
    in_scalar = 3 * H           # required by the cat/flatten shape repair (see header notes)
    out_scalar = 16

    key = jax.random.PRNGKey(0)
    k_r, k_i, k_p = jax.random.split(key, 3)
    x_real = jax.random.normal(k_r, (B, 3, N, in_vector), jnp.float32)
    x_imag = jax.random.normal(k_i, (B, 3, N, in_vector), jnp.float32)
    params = init_params(k_p, in_scalar, in_vector, out_scalar, out_vector)

    out_vec, out_sca = complex_gv_perceptron_vn(
        x_real, x_imag, params,
        in_scalar=in_scalar, in_vector=in_vector,
        out_scalar=out_scalar, out_vector=out_vector)
    jax.block_until_ready((out_vec, out_sca))

    assert out_vec.shape == (B, 3, N, out_vector)
    assert out_sca.shape == (B, N, out_scalar)
    assert bool(jnp.all(jnp.isfinite(out_vec))) and bool(jnp.all(jnp.isfinite(out_sca)))

    # Loose tolerance: kernel uses EUP approximate reciprocals (softmax denom, VN projection).
    ref_vec, ref_sca = _reference(x_real, x_imag, params, out_scalar=out_scalar)
    assert bool(jnp.allclose(out_vec, ref_vec, rtol=5e-2, atol=5e-2))
    assert bool(jnp.allclose(out_sca, ref_sca, rtol=5e-2, atol=5e-2))
    print("KERNEL_OK")
</pallas_src>

<mosaic_0001>
module attributes {stable_mosaic.version = 11 : i64} {
  func.func @_gv_perceptron_kernel(%arg0: i32, %arg1: memref<1x3x8x8xf32, #tpu.memory_space<vmem>>, %arg2: memref<1x3x8x8xf32, #tpu.memory_space<vmem>>, %arg3: memref<8x256xf32, #tpu.memory_space<vmem>>, %arg4: memref<8x256xf32, #tpu.memory_space<vmem>>, %arg5: memref<4x128x128xf32, #tpu.memory_space<vmem>>, %arg6: memref<128x128xf32, #tpu.memory_space<vmem>>, %arg7: memref<1x128xf32, #tpu.memory_space<vmem>>, %arg8: memref<128x128xf32, #tpu.memory_space<vmem>>, %arg9: memref<1x3x8x128xf32, #tpu.memory_space<vmem>>, %arg10: memref<1x8x128xf32, #tpu.memory_space<vmem>>) attributes {dimension_semantics = [#tpu.dimension_semantics<parallel>], iteration_bounds = array<i64: 2>, scalar_prefetch = 0 : i64, scratch_operands = 0 : i64, tpu.core_type = #tpu.core_type<tc>, window_params = [{transform_indices = @transform_0, window_bounds = array<i64: 1, 3, 8, 8>}, {transform_indices = @transform_1, window_bounds = array<i64: 1, 3, 8, 8>}, {pipeline_mode = #tpu.pipeline_mode<synchronous>, transform_indices = @transform_2, window_bounds = array<i64: 8, 256>}, {pipeline_mode = #tpu.pipeline_mode<synchronous>, transform_indices = @transform_3, window_bounds = array<i64: 8, 256>}, {pipeline_mode = #tpu.pipeline_mode<synchronous>, transform_indices = @transform_4, window_bounds = array<i64: 4, 128, 128>}, {pipeline_mode = #tpu.pipeline_mode<synchronous>, transform_indices = @transform_5, window_bounds = array<i64: 128, 128>}, {pipeline_mode = #tpu.pipeline_mode<synchronous>, transform_indices = @transform_6, window_bounds = array<i64: 1, 128>}, {pipeline_mode = #tpu.pipeline_mode<synchronous>, transform_indices = @transform_7, window_bounds = array<i64: 128, 128>}, {transform_indices = @transform_8, window_bounds = array<i64: 1, 3, 8, 128>}, {transform_indices = @transform_9, window_bounds = array<i64: 1, 8, 128>}]} {
    %c0 = arith.constant 0 : index
    %c0_0 = arith.constant 0 : index
    %c0_1 = arith.constant 0 : index
    %c0_2 = arith.constant 0 : index
    %0 = vector.load %arg1[%c0, %c0_0, %c0_1, %c0_2] : memref<1x3x8x8xf32, #tpu.memory_space<vmem>>, vector<1x3x8x8xf32>
    %1 = vector.shape_cast %0 : vector<1x3x8x8xf32> to vector<24x8xf32>
    %c0_3 = arith.constant 0 : index
    %c0_4 = arith.constant 0 : index
    %c0_5 = arith.constant 0 : index
    %c0_6 = arith.constant 0 : index
    %2 = vector.load %arg2[%c0_3, %c0_4, %c0_5, %c0_6] : memref<1x3x8x8xf32, #tpu.memory_space<vmem>>, vector<1x3x8x8xf32>
    %3 = vector.shape_cast %2 : vector<1x3x8x8xf32> to vector<24x8xf32>
    %c0_7 = arith.constant 0 : index
    %c0_8 = arith.constant 0 : index
    %4 = vector.load %arg3[%c0_7, %c0_8] : memref<8x256xf32, #tpu.memory_space<vmem>>, vector<8x256xf32>
    %cst = arith.constant dense<0.000000e+00> : vector<24x256xf32>
    %5 = tpu.matmul %1, %4, %cst {dimension_numbers = #tpu.dot_dimension_numbers<[1], [0], [0], [1], [0, 0, 1, 1], [], []>} : vector<24x8xf32>, vector<8x256xf32>, vector<24x256xf32> -> vector<24x256xf32>
    %c0_9 = arith.constant 0 : index
    %c0_10 = arith.constant 0 : index
    %6 = vector.load %arg4[%c0_9, %c0_10] : memref<8x256xf32, #tpu.memory_space<vmem>>, vector<8x256xf32>
    %cst_11 = arith.constant dense<0.000000e+00> : vector<24x256xf32>
    %7 = tpu.matmul %3, %6, %cst_11 {dimension_numbers = #tpu.dot_dimension_numbers<[1], [0], [0], [1], [0, 0, 1, 1], [], []>} : vector<24x8xf32>, vector<8x256xf32>, vector<24x256xf32> -> vector<24x256xf32>
    %8 = vector.extract_strided_slice %5 {offsets = [0, 0], sizes = [24, 128], strides = [1, 1]} : vector<24x256xf32> to vector<24x128xf32>
    %9 = vector.extract_strided_slice %5 {offsets = [0, 128], sizes = [24, 128], strides = [1, 1]} : vector<24x256xf32> to vector<24x128xf32>
    %10 = vector.extract_strided_slice %7 {offsets = [0, 0], sizes = [24, 128], strides = [1, 1]} : vector<24x256xf32> to vector<24x128xf32>
    %11 = vector.extract_strided_slice %7 {offsets = [0, 128], sizes = [24, 128], strides = [1, 1]} : vector<24x256xf32> to vector<24x128xf32>
    %12 = arith.subf %8, %10 : vector<24x128xf32>
    %13 = vector.shape_cast %12 : vector<24x128xf32> to vector<1x3x8x128xf32>
    %14 = arith.addf %8, %10 : vector<24x128xf32>
    %15 = vector.shape_cast %14 : vector<24x128xf32> to vector<1x3x8x128xf32>
    %16 = arith.addf %9, %11 : vector<24x128xf32>
    %17 = vector.shape_cast %16 : vector<24x128xf32> to vector<1x3x8x128xf32>
    %18 = vector.extract_strided_slice %15 {offsets = [0, 0, 0, 0], sizes = [1, 1, 8, 128], strides = [1, 1, 1, 1]} : vector<1x3x8x128xf32> to vector<1x1x8x128xf32>
    %19 = vector.shape_cast %18 : vector<1x1x8x128xf32> to vector<1x8x128xf32>
    %20 = vector.extract_strided_slice %15 {offsets = [0, 0, 0, 0], sizes = [1, 1, 8, 128], strides = [1, 1, 1, 1]} : vector<1x3x8x128xf32> to vector<1x1x8x128xf32>
    %21 = vector.shape_cast %20 : vector<1x1x8x128xf32> to vector<1x8x128xf32>
    %22 = arith.mulf %19, %21 : vector<1x8x128xf32>
    %23 = vector.extract_strided_slice %15 {offsets = [0, 1, 0, 0], sizes = [1, 1, 8, 128], strides = [1, 1, 1, 1]} : vector<1x3x8x128xf32> to vector<1x1x8x128xf32>
    %24 = vector.shape_cast %23 : vector<1x1x8x128xf32> to vector<1x8x128xf32>
    %25 = vector.extract_strided_slice %15 {offsets = [0, 1, 0, 0], sizes = [1, 1, 8, 128], strides = [1, 1, 1, 1]} : vector<1x3x8x128xf32> to vector<1x1x8x128xf32>
    %26 = vector.shape_cast %25 : vector<1x1x8x128xf32> to vector<1x8x128xf32>
    %27 = arith.mulf %24, %26 : vector<1x8x128xf32>
    %28 = arith.addf %22, %27 : vector<1x8x128xf32>
    %29 = vector.extract_strided_slice %15 {offsets = [0, 2, 0, 0], sizes = [1, 1, 8, 128], strides = [1, 1, 1, 1]} : vector<1x3x8x128xf32> to vector<1x1x8x128xf32>
    %30 = vector.shape_cast %29 : vector<1x1x8x128xf32> to vector<1x8x128xf32>
    %31 = vector.extract_strided_slice %15 {offsets = [0, 2, 0, 0], sizes = [1, 1, 8, 128], strides = [1, 1, 1, 1]} : vector<1x3x8x128xf32> to vector<1x1x8x128xf32>
    %32 = vector.shape_cast %31 : vector<1x1x8x128xf32> to vector<1x8x128xf32>
    %33 = arith.mulf %30, %32 : vector<1x8x128xf32>
    %34 = arith.addf %28, %33 : vector<1x8x128xf32>
    %35 = math.sqrt %34 : vector<1x8x128xf32>
    %36 = vector.shape_cast %35 : vector<1x8x128xf32> to vector<8x128xf32>
    %c0_12 = arith.constant 0 : index
    %c0_13 = arith.constant 0 : index
    %c0_14 = arith.constant 0 : index
    %37 = vector.load %arg5[%c0_12, %c0_13, %c0_14] : memref<4x128x128xf32, #tpu.memory_space<vmem>>, vector<1x128x128xf32>
    %38 = vector.shape_cast %37 : vector<1x128x128xf32> to vector<128x128xf32>
    %cst_15 = arith.constant dense<0.000000e+00> : vector<8x128xf32>
    %39 = tpu.matmul %36, %38, %cst_15 {dimension_numbers = #tpu.dot_dimension_numbers<[1], [0], [0], [1], [0, 0, 1, 1], [], []>} : vector<8x128xf32>, vector<128x128xf32>, vector<8x128xf32> -> vector<8x128xf32>
    %40 = vector.extract_strided_slice %13 {offsets = [0, 0, 0, 0], sizes = [1, 1, 8, 128], strides = [1, 1, 1, 1]} : vector<1x3x8x128xf32> to vector<1x1x8x128xf32>
    %41 = vector.shape_cast %40 : vector<1x1x8x128xf32> to vector<1x8x128xf32>
    %42 = vector.shape_cast %41 : vector<1x8x128xf32> to vector<8x128xf32>
    %c1 = arith.constant 1 : index
    %c0_16 = arith.constant 0 : index
    %c0_17 = arith.constant 0 : index
    %43 = vector.load %arg5[%c1, %c0_16, %c0_17] : memref<4x128x128xf32, #tpu.memory_space<vmem>>, vector<1x128x128xf32>
    %44 = vector.shape_cast %43 : vector<1x128x128xf32> to vector<128x128xf32>
    %cst_18 = arith.constant dense<0.000000e+00> : vector<8x128xf32>
    %45 = tpu.matmul %42, %44, %cst_18 {dimension_numbers = #tpu.dot_dimension_numbers<[1], [0], [0], [1], [0, 0, 1, 1], [], []>} : vector<8x128xf32>, vector<128x128xf32>, vector<8x128xf32> -> vector<8x128xf32>
    %46 = arith.addf %39, %45 : vector<8x128xf32>
    %47 = vector.extract_strided_slice %13 {offsets = [0, 1, 0, 0], sizes = [1, 1, 8, 128], strides = [1, 1, 1, 1]} : vector<1x3x8x128xf32> to vector<1x1x8x128xf32>
    %48 = vector.shape_cast %47 : vector<1x1x8x128xf32> to vector<1x8x128xf32>
    %49 = vector.shape_cast %48 : vector<1x8x128xf32> to vector<8x128xf32>
    %c2 = arith.constant 2 : index
    %c0_19 = arith.constant 0 : index
    %c0_20 = arith.constant 0 : index
    %50 = vector.load %arg5[%c2, %c0_19, %c0_20] : memref<4x128x128xf32, #tpu.memory_space<vmem>>, vector<1x128x128xf32>
    %51 = vector.shape_cast %50 : vector<1x128x128xf32> to vector<128x128xf32>
    %cst_21 = arith.constant dense<0.000000e+00> : vector<8x128xf32>
    %52 = tpu.matmul %49, %51, %cst_21 {dimension_numbers = #tpu.dot_dimension_numbers<[1], [0], [0], [1], [0, 0, 1, 1], [], []>} : vector<8x128xf32>, vector<128x128xf32>, vector<8x128xf32> -> vector<8x128xf32>
    %53 = arith.addf %46, %52 : vector<8x128xf32>
    %54 = vector.extract_strided_slice %13 {offsets = [0, 2, 0, 0], sizes = [1, 1, 8, 128], strides = [1, 1, 1, 1]} : vector<1x3x8x128xf32> to vector<1x1x8x128xf32>
    %55 = vector.shape_cast %54 : vector<1x1x8x128xf32> to vector<1x8x128xf32>
    %56 = vector.shape_cast %55 : vector<1x8x128xf32> to vector<8x128xf32>
    %c3 = arith.constant 3 : index
    %c0_22 = arith.constant 0 : index
    %c0_23 = arith.constant 0 : index
    %57 = vector.load %arg5[%c3, %c0_22, %c0_23] : memref<4x128x128xf32, #tpu.memory_space<vmem>>, vector<1x128x128xf32>
    %58 = vector.shape_cast %57 : vector<1x128x128xf32> to vector<128x128xf32>
    %cst_24 = arith.constant dense<0.000000e+00> : vector<8x128xf32>
    %59 = tpu.matmul %56, %58, %cst_24 {dimension_numbers = #tpu.dot_dimension_numbers<[1], [0], [0], [1], [0, 0, 1, 1], [], []>} : vector<8x128xf32>, vector<128x128xf32>, vector<8x128xf32> -> vector<8x128xf32>
    %60 = arith.addf %53, %59 : vector<8x128xf32>
    %c0_25 = arith.constant 0 : index
    %c0_26 = arith.constant 0 : index
    %61 = vector.load %arg6[%c0_25, %c0_26] : memref<128x128xf32, #tpu.memory_space<vmem>>, vector<128x128xf32>
    %cst_27 = arith.constant dense<0.000000e+00> : vector<8x128xf32>
    %62 = tpu.matmul %60, %61, %cst_27 {dimension_numbers = #tpu.dot_dimension_numbers<[1], [0], [0], [1], [0, 0, 1, 1], [], []>} : vector<8x128xf32>, vector<128x128xf32>, vector<8x128xf32> -> vector<8x128xf32>
    %c0_28 = arith.constant 0 : index
    %c0_29 = arith.constant 0 : index
    %63 = vector.load %arg7[%c0_28, %c0_29] : memref<1x128xf32, #tpu.memory_space<vmem>>, vector<1x128xf32>
    %64 = vector.broadcast %63 : vector<1x128xf32> to vector<8x128xf32>
    %65 = arith.addf %62, %64 : vector<8x128xf32>
    %66 = vector.shape_cast %65 : vector<8x128xf32> to vector<1x8x128xf32>
    %cst_30 = arith.constant dense<0xFF800000> : vector<1x128xf32>
    %67 = vector.multi_reduction <maximumf>, %66, %cst_30 [1] : vector<1x8x128xf32> to vector<1x128xf32>
    %68 = vector.shape_cast %67 : vector<1x128xf32> to vector<1x1x128xf32>
    %69 = vector.broadcast %68 : vector<1x1x128xf32> to vector<1x8x128xf32>
    %70 = arith.subf %66, %69 : vector<1x8x128xf32>
    %71 = math.exp %70 : vector<1x8x128xf32>
    %cst_31 = arith.constant dense<0.000000e+00> : vector<1x128xf32>
    %72 = vector.multi_reduction <add>, %71, %cst_31 [1] : vector<1x8x128xf32> to vector<1x128xf32>
    %73 = vector.shape_cast %72 : vector<1x128xf32> to vector<1x1x128xf32>
    %74 = tpu.reciprocal %73 {approx = true} : vector<1x1x128xf32> -> vector<1x1x128xf32>
    %75 = vector.broadcast %74 : vector<1x1x128xf32> to vector<1x8x128xf32>
    %76 = arith.mulf %71, %75 : vector<1x8x128xf32>
    %77 = vector.shape_cast %76 : vector<1x8x128xf32> to vector<1x1x8x128xf32>
    %78 = vector.broadcast %77 : vector<1x1x8x128xf32> to vector<1x3x8x128xf32>
    %79 = arith.mulf %17, %78 : vector<1x3x8x128xf32>
    %80 = vector.shape_cast %79 : vector<1x3x8x128xf32> to vector<24x128xf32>
    %c0_32 = arith.constant 0 : index
    %c0_33 = arith.constant 0 : index
    %81 = vector.load %arg8[%c0_32, %c0_33] : memref<128x128xf32, #tpu.memory_space<vmem>>, vector<128x128xf32>
    %cst_34 = arith.constant dense<0.000000e+00> : vector<24x128xf32>
    %82 = tpu.matmul %80, %81, %cst_34 {dimension_numbers = #tpu.dot_dimension_numbers<[1], [0], [0], [1], [0, 0, 1, 1], [], []>} : vector<24x128xf32>, vector<128x128xf32>, vector<24x128xf32> -> vector<24x128xf32>
    %83 = vector.shape_cast %82 : vector<24x128xf32> to vector<1x3x8x128xf32>
    %84 = arith.mulf %79, %83 : vector<1x3x8x128xf32>
    %85 = vector.extract_strided_slice %84 {offsets = [0, 0, 0, 0], sizes = [1, 1, 8, 128], strides = [1, 1, 1, 1]} : vector<1x3x8x128xf32> to vector<1x1x8x128xf32>
    %86 = vector.shape_cast %85 : vector<1x1x8x128xf32> to vector<1x8x128xf32>
    %87 = vector.extract_strided_slice %84 {offsets = [0, 1, 0, 0], sizes = [1, 1, 8, 128], strides = [1, 1, 1, 1]} : vector<1x3x8x128xf32> to vector<1x1x8x128xf32>
    %88 = vector.shape_cast %87 : vector<1x1x8x128xf32> to vector<1x8x128xf32>
    %89 = arith.addf %86, %88 : vector<1x8x128xf32>
    %90 = vector.extract_strided_slice %84 {offsets = [0, 2, 0, 0], sizes = [1, 1, 8, 128], strides = [1, 1, 1, 1]} : vector<1x3x8x128xf32> to vector<1x1x8x128xf32>
    %91 = vector.shape_cast %90 : vector<1x1x8x128xf32> to vector<1x8x128xf32>
    %92 = arith.addf %89, %91 : vector<1x8x128xf32>
    %93 = arith.mulf %83, %83 : vector<1x3x8x128xf32>
    %94 = vector.extract_strided_slice %93 {offsets = [0, 0, 0, 0], sizes = [1, 1, 8, 128], strides = [1, 1, 1, 1]} : vector<1x3x8x128xf32> to vector<1x1x8x128xf32>
    %95 = vector.shape_cast %94 : vector<1x1x8x128xf32> to vector<1x8x128xf32>
    %96 = vector.extract_strided_slice %93 {offsets = [0, 1, 0, 0], sizes = [1, 1, 8, 128], strides = [1, 1, 1, 1]} : vector<1x3x8x128xf32> to vector<1x1x8x128xf32>
    %97 = vector.shape_cast %96 : vector<1x1x8x128xf32> to vector<1x8x128xf32>
    %98 = arith.addf %95, %97 : vector<1x8x128xf32>
    %99 = vector.extract_strided_slice %93 {offsets = [0, 2, 0, 0], sizes = [1, 1, 8, 128], strides = [1, 1, 1, 1]} : vector<1x3x8x128xf32> to vector<1x1x8x128xf32>
    %100 = vector.shape_cast %99 : vector<1x1x8x128xf32> to vector<1x8x128xf32>
    %101 = arith.addf %98, %100 : vector<1x8x128xf32>
    %cst_35 = arith.constant 9.99999997E-7 : f32
    %102 = vector.broadcast %cst_35 : f32 to vector<1x8x128xf32>
    %103 = arith.addf %101, %102 : vector<1x8x128xf32>
    %104 = tpu.reciprocal %103 {approx = true} : vector<1x8x128xf32> -> vector<1x8x128xf32>
    %105 = arith.mulf %92, %104 : vector<1x8x128xf32>
    %cst_36 = arith.constant 0.000000e+00 : f32
    %106 = vector.broadcast %cst_36 : f32 to vector<1x8x128xf32>
    %107 = arith.cmpf olt, %92, %106 : vector<1x8x128xf32>
    %cst_37 = arith.constant 9.900000e-01 : f32
    %108 = vector.broadcast %cst_37 : f32 to vector<1x8x128xf32>
    %109 = arith.mulf %108, %105 : vector<1x8x128xf32>
    %cst_38 = arith.constant 0.000000e+00 : f32
    %110 = vector.broadcast %cst_38 : f32 to vector<1x8x128xf32>
    %111 = arith.select %107, %109, %110 : vector<1x8x128xi1>, vector<1x8x128xf32>
    %112 = vector.shape_cast %111 : vector<1x8x128xf32> to vector<1x1x8x128xf32>
    %113 = vector.broadcast %112 : vector<1x1x8x128xf32> to vector<1x3x8x128xf32>
    %114 = arith.mulf %113, %83 : vector<1x3x8x128xf32>
    %115 = arith.subf %79, %114 : vector<1x3x8x128xf32>
    %c0_39 = arith.constant 0 : index
    %c0_40 = arith.constant 0 : index
    %c0_41 = arith.constant 0 : index
    %c0_42 = arith.constant 0 : index
    %116 = vector.load %arg9[%c0_39, %c0_40, %c0_41, %c0_42] : memref<1x3x8x128xf32, #tpu.memory_space<vmem>>, vector<1x3x8x128xf32>
    tpu.vector_store %arg9[%c0_39, %c0_40, %c0_41, %c0_42], %115 {strides = array<i32>} : memref<1x3x8x128xf32, #tpu.memory_space<vmem>>, vector<1x3x8x128xf32>,
    %cst_43 = arith.constant 0.000000e+00 : f32
    %117 = vector.broadcast %cst_43 : f32 to vector<8x128xf32>
    %118 = arith.cmpf oge, %60, %117 : vector<8x128xf32>
    %cst_44 = arith.constant 0.00999999977 : f32
    %119 = vector.broadcast %cst_44 : f32 to vector<8x128xf32>
    %120 = arith.mulf %119, %60 : vector<8x128xf32>
    %121 = arith.select %118, %60, %120 : vector<8x128xi1>, vector<8x128xf32>
    %122 = vector.shape_cast %121 : vector<8x128xf32> to vector<1x8x128xf32>
    %c0_45 = arith.constant 0 : index
    %c0_46 = arith.constant 0 : index
    %c0_47 = arith.constant 0 : index
    %123 = vector.load %arg10[%c0_45, %c0_46, %c0_47] : memref<1x8x128xf32, #tpu.memory_space<vmem>>, vector<1x8x128xf32>
    tpu.vector_store %arg10[%c0_45, %c0_46, %c0_47], %122 {strides = array<i32>} : memref<1x8x128xf32, #tpu.memory_space<vmem>>, vector<1x8x128xf32>,
    return
  }
  func.func @transform_0(%arg0: i32) -> (i32, i32, i32, i32) {
    %c0_i32 = arith.constant 0 : i32
    %c0_i32_0 = arith.constant 0 : i32
    %c0_i32_1 = arith.constant 0 : i32
    %c0_i32_2 = arith.constant 0 : i32
    return %arg0, %c0_i32, %c0_i32_0, %c0_i32_1 : i32, i32, i32, i32
  }
  func.func @transform_1(%arg0: i32) -> (i32, i32, i32, i32) {
    %c0_i32 = arith.constant 0 : i32
    %c0_i32_0 = arith.constant 0 : i32
    %c0_i32_1 = arith.constant 0 : i32
    %c0_i32_2 = arith.constant 0 : i32
    return %arg0, %c0_i32, %c0_i32_0, %c0_i32_1 : i32, i32, i32, i32
  }
  func.func @transform_2(%arg0: i32) -> (i32, i32) {
    %c0_i32 = arith.constant 0 : i32
    %c0_i32_0 = arith.constant 0 : i32
    %c0_i32_1 = arith.constant 0 : i32
    return %c0_i32, %c0_i32_0 : i32, i32
  }
  func.func @transform_3(%arg0: i32) -> (i32, i32) {
    %c0_i32 = arith.constant 0 : i32
    %c0_i32_0 = arith.constant 0 : i32
    %c0_i32_1 = arith.constant 0 : i32
    return %c0_i32, %c0_i32_0 : i32, i32
  }
  func.func @transform_4(%arg0: i32) -> (i32, i32, i32) {
    %c0_i32 = arith.constant 0 : i32
    %c0_i32_0 = arith.constant 0 : i32
    %c0_i32_1 = arith.constant 0 : i32
    %c0_i32_2 = arith.constant 0 : i32
    return %c0_i32, %c0_i32_0, %c0_i32_1 : i32, i32, i32
  }
  func.func @transform_5(%arg0: i32) -> (i32, i32) {
    %c0_i32 = arith.constant 0 : i32
    %c0_i32_0 = arith.constant 0 : i32
    %c0_i32_1 = arith.constant 0 : i32
    return %c0_i32, %c0_i32_0 : i32, i32
  }
  func.func @transform_6(%arg0: i32) -> (i32, i32) {
    %c0_i32 = arith.constant 0 : i32
    %c0_i32_0 = arith.constant 0 : i32
    %c0_i32_1 = arith.constant 0 : i32
    return %c0_i32, %c0_i32_0 : i32, i32
  }
  func.func @transform_7(%arg0: i32) -> (i32, i32) {
    %c0_i32 = arith.constant 0 : i32
    %c0_i32_0 = arith.constant 0 : i32
    %c0_i32_1 = arith.constant 0 : i32
    return %c0_i32, %c0_i32_0 : i32, i32
  }
  func.func @transform_8(%arg0: i32) -> (i32, i32, i32, i32) {
    %c0_i32 = arith.constant 0 : i32
    %c0_i32_0 = arith.constant 0 : i32
    %c0_i32_1 = arith.constant 0 : i32
    %c0_i32_2 = arith.constant 0 : i32
    return %arg0, %c0_i32, %c0_i32_0, %c0_i32_1 : i32, i32, i32, i32
  }
  func.func @transform_9(%arg0: i32) -> (i32, i32, i32) {
    %c0_i32 = arith.constant 0 : i32
    %c0_i32_0 = arith.constant 0 : i32
    %c0_i32_1 = arith.constant 0 : i32
    return %arg0, %c0_i32, %c0_i32_0 : i32, i32, i32
  }
}

</mosaic_0001>

<bundles_post_ra>
// kernel: tpu_custom_call.1
= control target key start
LH: loop header
LB: loop body
LE: loop exit
PB: predicated region body
PF: predicated region fallthrough
CT: control target
= control target key end

     0   :  { %s2816_s0 = inlined_call_operand.hbm [shape: f32[2,3,8,8], index: 0, kind: input, shape index: {}]   ;;  %s2817_s1 = inlined_call_operand.hbm [shape: f32[2,3,8,8], index: 1, kind: input, shape index: {}]   ;;  %s2818_s2 = inlined_call_operand.hbm [shape: f32[8,256], index: 2, kind: input, shape index: {}]   ;;  %s2819_s3 = inlined_call_operand.hbm [shape: f32[8,256], index: 3, kind: input, shape index: {}]   ;;  %s2820_s4 = inlined_call_operand.hbm [shape: f32[4,128,128], index: 4, kind: input, shape index: {}]   ;;  %s2821_s5 = inlined_call_operand.hbm [shape: f32[128,128], index: 5, kind: input, shape index: {}]   ;;  %s2822_s6 = inlined_call_operand.vmem [shape: f32[1,128], index: 6, kind: input, shape index: {}]   ;;  %s2823_s7 = inlined_call_operand.hbm [shape: f32[128,128], index: 7, kind: input, shape index: {}]   ;;  %s2824_s8 = inlined_call_operand.hbm [shape: f32[2,3,8,128], index: 8, kind: output, shape index: {0}]   ;;  %s2825_s9 = inlined_call_operand.hbm [shape: f32[2,8,128], index: 9, kind: output, shape index: {1}]  }
   0x1   :  { %2834 = sst [smem:[#allocation24_spill]] %s2816_s0 }
   0x2   :  { %2835 = sst [smem:[#allocation25_spill]] %s2818_s2 }
   0x3   :  { %2836 = sst [smem:[#allocation26_spill]] %s2819_s3 }
   0x4   :  { %2837 = sst [smem:[#allocation27_spill]] %s2820_s4 }
   0x5   :  { %2838 = sst [smem:[#allocation28_spill]] %s2821_s5 }
   0x6   :  { %2839 = sst [smem:[#allocation29_spill]] %s2823_s7 }
   0x7   :  { %15 = vsyncpa [#allocation3], 0 }
   0x8   :  { %17 = vsyncpa [#allocation3 + $0x1], 0 }
   0x9   :  { %18 = vsyncpa [#allocation6], 0 }
   0xa   :  { %20 = vsyncpa [#allocation6 + $0x1], 0 }
   0xb   :  { %21 = vsyncpa [#allocation9], 0 }
   0xc   :  { %22 = vsyncpa [#allocation12], 0 }
   0xd   :  { %23 = vsyncpa [#allocation4], 0 }
   0xe   :  { %25 = vsyncpa [#allocation4 + $0x1], 0 }
   0xf   :  { %26 = vsyncpa [#allocation16], 0 }
  0x10   :  { %28 = vsyncpa [#allocation16 + $0x1], 0  ;;  %s2319_s30 = smov 0   ;;  %s2321_s10 = smov 0  }
  0x11   :  { %s2323_s11 = smov 0   ;;  %s2325_s12 = smov 0  }
  0x12 LB: > { %s2254_s13 = smov [#allocation7]   ;;  %s2340_s15 = sadd.s32 4294967295, %s2252_s12   ;;  %s2252_s12 = sphi %s2325_s12, %s2871_s12   ;;  %s2248_s11 = sphi %s2323_s11, %s2870_s11   ;;  %s2244_s10 = sphi %s2321_s10, %s2869_s10   ;;  %s2240_s30 = sphi %s2319_s30, %s2868_s30  }
  0x13   : > { %s282_s14 = sshll.u32 %s2254_s13, 4  ;;  %p1481_p0 = scmp.ge.s32.totalorder %s2252_s12, 1  ;;  %s283_s14 = int_to_ptr.vmem [resolvable:$true] %s282_s14 }
  0x14   : > { %p2826_p1 = scmp.eq.s32.totalorder %s2340_s15, 0  ;;  %p269_p2 = scmp.lt.s32.totalorder %s2252_s12, 3 }
  0x15   : > { %s2255_s17 = smov [#allocation8]   ;;  %s2256_s20 = smov [#allocation11]  }
  0x16   : > { %p2345_p3 = pnand %p1481_p0, %p269_p2  ;;  %s293_s18 = sshll.u32 %s2255_s17, 4  ;;  %s294_s18 = int_to_ptr.vmem [resolvable:$true] %s293_s18 }
  0x17   : > { %s316_s21 = sshll.u32 %s2256_s20, 4  ;;  %s1967_s23 = scalar_lea.vmem %s283_s14, 256  ;;  %s2358_s21 = int_to_ptr.vmem [resolvable:$true] %s316_s21 }
  0x18   : > { %s2840_s16 = scalar_select %p2345_p3, 1, 0 }
  0x19   : > { %p1863_p5 = pneg %p2345_p3  ;;  %p1968_p8 = scmp.ne.s32.totalorder %s283_s14, %s1967_s23 }
  0x1a   : > { %p1975_p11 = scmp.lt.s32.totalorder %s283_s14, %s283_s14  ;;  %p1976_p12 = scmp.lt.s32.totalorder %s1967_s23, %s1967_s23 }
  0x1b   : > { %p2354_p6 = pnand %p1863_p5, %p2826_p1 }
  0x1c   : > { %p1977_p13 = por %p1976_p12, %p1975_p11 }
  0x1d   : > { %p2362_p7 = pneg %p2354_p6 }
  0x1f   : > { %p1970_p9 = pnand %p1968_p8, %p2362_p7 }
  0x21   : > { %p1971_p10 = pneg %p1970_p9 }
  0x23   : > { %p1978_p0 = pnand %p1977_p13, %p1971_p10 }
  0x25   : > { %1981 = shalt.err (!%p1978_p0)
}
  0x26   : > { %s2843_s2 = sld [smem:[#allocation25_spill]]  ;;  %s1993_s26 = scalar_lea.vmem %s294_s18, 256 }
  0x27   : > { %p1994_p2 = scmp.ne.s32.totalorder %s294_s18, %s1993_s26  ;;  %p2001_p1 = scmp.lt.s32.totalorder %s294_s18, %s294_s18 }
  0x28   : > { %p2002_p8 = scmp.lt.s32.totalorder %s1993_s26, %s1993_s26 }
  0x29   : > { %p1996_p5 = pnand %p1994_p2, %p2362_p7 }
  0x2a   : > { %p2003_p9 = por %p2002_p8, %p2001_p1 }
  0x2b   : > { %p1997_p4 = pneg %p1996_p5 }
  0x2c   : > { %1866 = dma.hbm_to_vmem [thread:$0]  (!%p2354_p6), %s2843_s2, 256, %s283_s14, [#allocation6]  }
  0x2d   : > { %p2004_p3 = pnand %p2003_p9, %p1997_p4 }
  0x2f   : > { %2007 = shalt.err (!%p2004_p3)
}
  0x30   : > { %s2844_s3 = sld [smem:[#allocation26_spill]]  ;;  %s2019_s29 = scalar_lea.vmem %s2358_s21, 2048 }
  0x31   : > { %p2020_p10 = scmp.ne.s32.totalorder %s2358_s21, %s2019_s29  ;;  %p2027_p13 = scmp.lt.s32.totalorder %s2358_s21, %s2358_s21 }
  0x32   : > { %p2028_p1 = scmp.lt.s32.totalorder %s2019_s29, %s2019_s29 }
  0x33   : > { %p2022_p11 = pnand %p2020_p10, %p2362_p7 }
  0x34   : > { %p2029_p4 = por %p2028_p1, %p2027_p13 }
  0x35   : > { %p2023_p12 = pneg %p2022_p11 }
  0x36   : > { %1869 = dma.hbm_to_vmem [thread:$0]  (!%p2354_p6), %s2844_s3, 256, %s294_s18, [#allocation9]  }
  0x37   : > { %p2030_p3 = pnand %p2029_p4, %p2023_p12 }
  0x39   : > { %2033 = shalt.err (!%p2030_p3)
}
  0x3a   : > { %s2828_s13 = smov 128   ;;  %s2830_s14 = smov 8  }
  0x3b   : > { %s2845_s5 = sld [smem:[#allocation28_spill]]  ;;  %s2259_s20 = smov [#allocation10]  }
  0x3c   : > { %s303_s23 = sshll.u32 %s2259_s20, 4  ;;  %s2260_s24 = smov [#allocation13]   ;;  %s304_s23 = int_to_ptr.vmem [resolvable:$true] %s303_s23 }
  0x3d   : > { %s332_s25 = sshll.u32 %s2260_s24, 4  ;;  %s2045_s26 = scalar_lea.vmem %s304_s23, 8192  ;;  %s333_s25 = int_to_ptr.vmem [resolvable:$true] %s332_s25 }
  0x3e   : > { %p2046_p0 = scmp.ne.s32.totalorder %s304_s23, %s2045_s26  ;;  %p2053_p8 = scmp.lt.s32.totalorder %s304_s23, %s304_s23 }
  0x3f   : > { %p2054_p9 = scmp.lt.s32.totalorder %s2045_s26, %s2045_s26 }
  0x40   : > { %p2048_p2 = pnand %p2046_p0, %p2362_p7 }
  0x41   : > { %1875 = dma.hbm_to_vmem [thread:$0]  (!%p2354_p6), %s2845_s5, 2048, %s2358_s21, [#allocation12], %s2828_s13, %s2828_s13, %s2830_s14  }
  0x42   : > { %p2049_p5 = pneg %p2048_p2  ;;  %p2055_p10 = por %p2054_p9, %p2053_p8 }
  0x44   : > { %p2056_p11 = pnand %p2055_p10, %p2049_p5 }
  0x46   : > { %2059 = shalt.err (!%p2056_p11)
}
  0x47   : > { %s2846_s4 = sld [smem:[#allocation27_spill]]  ;;  %s2071_s28 = scalar_lea.vmem %s333_s25, 2048 }
  0x48   : > { %p2072_p12 = scmp.ne.s32.totalorder %s333_s25, %s2071_s28  ;;  %p2079_p4 = scmp.lt.s32.totalorder %s333_s25, %s333_s25 }
  0x49   : > { %p2080_p3 = scmp.lt.s32.totalorder %s2071_s28, %s2071_s28 }
  0x4a   : > { %p2074_p13 = pnand %p2072_p12, %p2362_p7 }
  0x4b   : > { %p2081_p0 = por %p2080_p3, %p2079_p4 }
  0x4c   : > { %p2075_p1 = pneg %p2074_p13 }
  0x4d   : > { %1872 = dma.hbm_to_vmem [thread:$0]  (!%p2354_p6), %s2846_s4, 8192, %s304_s23, [#allocation9], %s2828_s13, %s2828_s13, %s2830_s14  }
  0x4e   : > { %p2082_p2 = pnand %p2081_p0, %p2075_p1 }
  0x50   : > { %2085 = shalt.err (!%p2082_p2)
}
  0x51   : > { %s2847_s7 = sld [smem:[#allocation29_spill]]  ;;  %s1480_s19 = sadd.s32 4294967294, %s2252_s12  }
  0x52   : > { %s2417_s22 = sadd.s32 1, %s2252_s12   ;;  %s41_s18 = sadd.s32 1, %s2248_s11 }
  0x53   : > { %s38_s20 = ssub.s32 %s2252_s12, %s2417_s22  ;;  %p48_p7 = scmp.ne.s32.totalorder %s2248_s11, %s2244_s10 }
  0x54   : > { %p39_p5 = scmp.eq.s32.totalorder %s38_s20, 0  ;;  %p49_p8 = scmp.eq.s32.totalorder %s2252_s12, 0 }
  0x55   : > { %p54_p9 = scmp.ne.s32.totalorder %s2244_s10, %s2240_s30  ;;  %p230_p10 = scmp.eq.s32.totalorder %s2340_s15, 1 }
  0x56   : > { %s2429_s23 = scalar_select %p39_p5, %s2248_s11, %s41_s18  }
  0x57   : > { %1878 = dma.hbm_to_vmem [thread:$0]  (!%p2354_p6), %s2847_s7, 2048, %s333_s25, [#allocation12], %s2828_s13, %s2828_s13, %s2830_s14  }
  0x58   : > { %p50_p11 = por %p49_p8, %p48_p7  ;;  %p2848_p12 = scmp.eq.s32.totalorder %s2340_s15, 0 }
  0x59   : > { %p2437_p13 = por %p230_p10, %p48_p7  ;;  %p236_p1 = scmp.eq.s32.totalorder %s1480_s19, 1 }
  0x5a   : > { %p2433_p6 = por %p2848_p12, %p54_p9  ;;  %p1898_p4 = scmp.lt.s32.totalorder %s2252_s12, 2 }
  0x5b   : > { %s2850_s25 = scalar_select %p2437_p13, 1, 0 }
  0x5c   : > { %s346_s26 = sand.u32 1, %s2248_s11   ;;  %p2443_p3 = por %p236_p1, %p54_p9 }
  0x5d   : > { %s2447_s27 = smul.u32 24, %s346_s26  ;;  %p2449_p0 = pnand %p1898_p4, %p50_p11 }
  0x5e   : > { %s2851_s21 = scalar_select %p2443_p3, 1, 0 }
  0x5f   : > { %s2832_s29 = smul.u32 384, %s2252_s12  ;;  %s2853_s0 = sld [smem:[#allocation24_spill]] }
  0x60   : > { %s350_s13 = scalar_lea.vmem [#allocation2], %s2447_s27  ;;  %s2465_s2 = scalar_lea.sflag [#allocation3], %s346_s26 }
  0x61   : > { %s357_s14 = sshll.u32 %s350_s13, 4  ;;  %p2088_p7 = pneg %p2449_p0  ;;  %s2463_s14 = int_to_ptr.vmem [resolvable:$true] %s357_s14 }
  0x65   : > { %s2460_s20 = scalar_lea.hbm %s2853_s0, %s2832_s29  ;;  %s2091_s17 = scalar_lea.hbm %s2853_s0, 768 }
  0x66   : > { %s2086_s3 = scalar_lea.hbm %s2460_s20, 384  ;;  %p2092_p9 = scmp.lt.s32.totalorder %s2460_s20, %s2853_s0 }
  0x67   : > { %p2087_p2 = scmp.ne.s32.totalorder %s2460_s20, %s2086_s3  ;;  %p2093_p10 = scmp.lt.s32.totalorder %s2091_s17, %s2086_s3 }
  0x69   : > { %p2089_p5 = pnand %p2088_p7, %p2087_p2  ;;  %p2094_p11 = por %p2093_p10, %p2092_p9 }
  0x6b   : > { %p2090_p8 = pneg %p2089_p5 }
  0x6d   : > { %p2095_p12 = pnand %p2094_p11, %p2090_p8 }
  0x6f   : > { %2098 = shalt.err (!%p2095_p12)
}
  0x70   : > { %s2099_s13 = scalar_lea.vmem %s2463_s14, 384  ;;  %s2261_s26 = smov [#allocation2]  }
  0x71   : > { %p2100_p1 = scmp.ne.s32.totalorder %s2463_s14, %s2099_s13  ;;  %s2104_s18 = sshll.u32 %s2261_s26, 4  ;;  %s2105_s18 = int_to_ptr.vmem [resolvable:$false] %s2104_s18 }
  0x72   : > { %s2106_s19 = scalar_lea.vmem %s2105_s18, 768  ;;  %p2107_p5 = scmp.lt.s32.totalorder %s2463_s14, %s2105_s18 }
  0x73   : > { %p2102_p4 = pnand %p2100_p1, %p2088_p7  ;;  %p2108_p3 = scmp.lt.s32.totalorder %s2106_s19, %s2099_s13 }
  0x75   : > { %p2103_p2 = pneg %p2102_p4  ;;  %p2109_p13 = por %p2108_p3, %p2107_p5 }
  0x77   : > { %p2110_p9 = pnand %p2109_p13, %p2103_p2 }
  0x79   : > { %2113 = shalt.err (!%p2110_p9)
}
  0x7a   : > { %s2854_s3 = smov 8   ;;  %s2855_s4 = smov 128  }
  0x7b   : > { %1882 = dma.hbm_to_vmem [thread:$0]  (!%p2449_p0), %s2460_s20, 384, %s2463_s14, %s2465_s2, %s2855_s4, %s2855_s4, %s2854_s3  }
  0x7c   : > { %s2856_s29 = smul.u32 384, %s2252_s12  ;;  %s371_s18 = scalar_lea.vmem [#allocation5], %s2447_s27 }
  0x7d   : > { %s378_s19 = sshll.u32 %s371_s18, 4  ;;  %s2857_s0 = sand.u32 1, %s2252_s12   ;;  %s2503_s19 = int_to_ptr.vmem [resolvable:$true] %s378_s19 }
  0x7e   : > { %s2500_s13 = scalar_lea.hbm %s2817_s1, %s2856_s29  ;;  %s368_s5 = scalar_lea.sflag [#allocation6], %s2857_s0 }
  0x7f   : > { %s2114_s7 = scalar_lea.hbm %s2500_s13, 384  ;;  %s2119_s20 = scalar_lea.hbm %s2817_s1, 768 }
  0x80   : > { %p2115_p13 = scmp.ne.s32.totalorder %s2500_s13, %s2114_s7  ;;  %p2120_p10 = scmp.lt.s32.totalorder %s2500_s13, %s2817_s1 }
  0x81   : > { %p2121_p11 = scmp.lt.s32.totalorder %s2119_s20, %s2114_s7 }
  0x82   : > { %p2117_p3 = pnand %p2115_p13, %p2088_p7 }
  0x83   : > { %p2122_p12 = por %p2121_p11, %p2120_p10 }
  0x84   : > { %p2118_p8 = pneg %p2117_p3 }
  0x86   : > { %p2123_p1 = pnand %p2122_p12, %p2118_p8 }
  0x88   : > { %2126 = shalt.err (!%p2123_p1)
}
  0x89   : > { %s2127_s0 = scalar_lea.vmem %s2503_s19, 384  ;;  %s2262_s27 = smov [#allocation5]  }
  0x8a   : > { %p2128_p4 = scmp.ne.s32.totalorder %s2503_s19, %s2127_s0  ;;  %s2132_s26 = sshll.u32 %s2262_s27, 4  ;;  %s2133_s26 = int_to_ptr.vmem [resolvable:$false] %s2132_s26 }
  0x8b   : > { %s2134_s18 = scalar_lea.vmem %s2133_s26, 768  ;;  %p2135_p9 = scmp.lt.s32.totalorder %s2503_s19, %s2133_s26 }
  0x8c   : > { %p2130_p2 = pnand %p2128_p4, %p2088_p7  ;;  %p2136_p13 = scmp.lt.s32.totalorder %s2134_s18, %s2127_s0 }
  0x8e   : > { %p2131_p5 = pneg %p2130_p2  ;;  %p2137_p3 = por %p2136_p13, %p2135_p9 }
  0x90   : > { %p2138_p10 = pnand %p2137_p3, %p2131_p5 }
  0x92   : > { %2141 = shalt.err (!%p2138_p10)
}
  0x93   : > { %1885 = dma.hbm_to_vmem [thread:$0]  (!%p2449_p0), %s2500_s13, 384, %s2503_s19, %s368_s5, %s2855_s4, %s2855_s4, %s2854_s3  }
  0x94   : > { %p2858_p7 = scmp.ne.s32.totalorder %s2840_s16, 0 }
  0x95   : > { %s2535_s7 = sand.u32 (!%p2858_p7), 1, %s2244_s10  }
  0x96   : > { %390 = sbr.rel (%p2858_p7) target bundleno = 1124 (0x464), region = 52  ;;  %s393_s14 = scalar_lea.sflag (!%p2858_p7), [#allocation3], %s2535_s7 }
  0x97   : > { %s2538_s2 = smul.u32 (!%p2858_p7), 24, %s2535_s7 }
  0x99   : > { %s2542_s28 = scalar_lea.vmem (!%p2858_p7), [#allocation2], %s2538_s2 }
  0x9b   : > { %2211 = dma.done.wait (%p2433_p6), %s393_s14, 384  }
  0x9c   : > { %2213 = vsyncadd (%p2433_p6), %s393_s14, 4294966912  ;;  %s401_s5 = sand.u32 1, %s2340_s15   ;;  %s2550_s3 = scalar_lea.vmem [#allocation5], %s2538_s2 }
  0x9d   : > { %s402_s16 = scalar_lea.sflag [#allocation6], %s401_s5 }
  0x9e   : > { %2215 = dma.done.wait (%p2433_p6), %s402_s16, 384  }
  0x9f   : > { %2217 = vsyncadd (%p2433_p6), %s402_s16, 4294966912  ;;  %p2859_p0 = scmp.eq.s32.totalorder %s2340_s15, 0 }
  0xa1   : > { %2219 = dma.done.wait (%p2859_p0), [#allocation6], 256   ;;  %p2860_p8 = pmov %p2859_p0 }
  0xa2   : > { %p2861_p11 = pmov %p2859_p0 }
  0xa3   : > { %2221 = vsyncadd (%p2860_p8), [#allocation6], 4294967040 }
  0xa4   : > { %2223 = dma.done.wait (%p2861_p11), [#allocation9], 8448   ;;  %p2862_p12 = pmov %p2859_p0 }
  0xa5   : > { %p2863_p1 = pmov %p2859_p0 }
  0xa6   : > { %2225 = vsyncadd (%p2862_p12), [#allocation9], 4294958848 }
  0xa7   : > { %2227 = dma.done.wait (%p2863_p1), [#allocation12], 4096   ;;  %p2864_p4 = pmov %p2859_p0 }
  0xa8   : > { %v2263_v0 = vmov 0.0   ;;  %v477_v1 = vld [vmem:[#allocation7 + $0x8] sm:$0xff]  ;;  %v572_v2 = vld [vmem:[#allocation8 + $0x8] sm:$0xff]  ;;  %v476_v3 = vld [vmem:[#allocation7] sm:$0xff]  ;;  %vm478_vm0 = vcmask 64512   ;;  %vm2264_vm1 = vmmov 0  }
  0xa9   : > { %2229 = vsyncadd (%p2864_p4), [#allocation12], 4294963200  ;;  %552 = vmatprep.mubr.f32.mxu0 %v2263_v0  ;;  %646 = vmatprep.mubr.f32.mxu1 %v2263_v0  ;;  %v571_v4 = vld [vmem:[#allocation8] sm:$0xff]  ;;  %v470_v5 = vld [vmem:[%s2542_s28] sm:$0xff]  ;;  %s1496_s24 = sshll.u32 %s2535_s7, 3  ;;  %s1506_s20 = sshll.u32 %s2340_s15, 7 }
  0xaa   : > { %518 = vmatprep.subr.mxu0 %v477_v1  ;;  %612 = vmatprep.subr.mxu1 %v572_v2  ;;  %v473_v6 = vld [vmem:[%s2550_s3] sm:$0xff]  ;;  %v718_v7 = vld [vmem:[#allocation10 + $0xf8] sm:$0xff]  ;;  %v471_v8 = vld [vmem:[%s2542_s28 + $0x8] sm:$0xff]  ;;  %s2704_s4 = scalar_lea.vmem [#allocation15], %s1496_s24  ;;  %s1306_s0 = scalar_lea.hbm %s2825_s9, %s1506_s20 }
  0xab   : > { %519 = vmatpush1.msra.mxu0 %v476_v3  ;;  %613 = vmatpush1.msra.mxu1 %v571_v4  ;;  %v474_v9 = vld [vmem:[%s2550_s3 + $0x8] sm:$0xff]  ;;  %v472_v11 = vld [vmem:[%s2542_s28 + $0x10] sm:$0xff]  ;;  %v475_v12 = vld [vmem:[%s2550_s3 + $0x10] sm:$0xff]  ;;  %s1308_s27 = sshll.u32 %s2704_s4, 4  ;;  %s1279_s26 = scalar_lea.sflag [#allocation16], %s2535_s7  ;;  %s1309_s27 = int_to_ptr.vmem [resolvable:$true] %s1308_s27 }
  0xac   : > { %1497 = vmatmul.mubr.msk.f32.vlgmr.msra.gmra.mxu0 %vm478_vm0, %v470_v5  ;;  %1500 = vmatmul.mubr.msk.f32.vlgmr.msra.gmra.mxu1 %vm478_vm0, %v473_v6  ;;  %v717_v10 = vld [vmem:[#allocation10 + $0xf0] sm:$0xff]  ;;  %v716_v13 = vld [vmem:[#allocation10 + $0xe8] sm:$0xff]  ;;  %v715_v14 = vld [vmem:[#allocation10 + $0xe0] sm:$0xff]  ;;  %s2142_s18 = scalar_lea.vmem %s1309_s27, 128  ;;  %p2865_p2 = scmp.ne.s32.totalorder %s2850_s25, 0 }
  0xad   : > { %558 = vmatprep.mubr.f32.mxu0 %v2263_v0  ;;  %652 = vmatprep.mubr.f32.mxu1 %v2263_v0  ;;  %v714_v15 = vld [vmem:[#allocation10 + $0xd8] sm:$0xff]  ;;  %v713_v16 = vld [vmem:[#allocation10 + $0xd0] sm:$0xff]  ;;  %v712_v17 = vld [vmem:[#allocation10 + $0xc8] sm:$0xff]  ;;  %p2143_p6 = scmp.ne.s32.totalorder %s1309_s27, %s2142_s18  ;;  %s2265_s14 = smov [#allocation15]  }
  0xae   : > { %1613 = vmatprep.subr.mxu0 %v2263_v0  ;;  %1648 = vmatprep.subr.mxu1 %v2263_v0  ;;  %v711_v18 = vld [vmem:[#allocation10 + $0xc0] sm:$0xff]  ;;  %v710_v19 = vld [vmem:[#allocation10 + $0xb8] sm:$0xff]  ;;  %v709_v20 = vld [vmem:[#allocation10 + $0xb0] sm:$0xff]  ;;  %s2146_s28 = sshll.u32 %s2265_s14, 4  ;;  %s2147_s28 = int_to_ptr.vmem [resolvable:$false] %s2146_s28 }
  0xaf   : > { %1614 = vmatpush3.msra.mxu0 %v718_v7  ;;  %v708_v21 = vld [vmem:[#allocation10 + $0xa8] sm:$0xff]  ;;  %v707_v22 = vld [vmem:[#allocation10 + $0xa0] sm:$0xff]  ;;  %v706_v23 = vld [vmem:[#allocation10 + $0x98] sm:$0xff]  ;;  %p2144_p5 = pnand %p2143_p6, %p2865_p2  ;;  %s2148_s5 = scalar_lea.vmem %s2147_s28, 256 }
  0xb0   : > { %1498 = vmatmul.mubr.msk.f32.gmra.mxu0 %vm478_vm0, %v471_v8  ;;  %1501 = vmatmul.mubr.msk.f32.gmra.mxu1 %vm478_vm0, %v474_v9  ;;  %v705_v24 = vld [vmem:[#allocation10 + $0x90] sm:$0xff]  ;;  %v704_v25 = vld [vmem:[#allocation10 + $0x88] sm:$0xff]  ;;  %v703_v26 = vld [vmem:[#allocation10 + $0x80] sm:$0xff]  ;;  %p2149_p13 = scmp.lt.s32.totalorder %s1309_s27, %s2147_s28  ;;  %p2150_p3 = scmp.lt.s32.totalorder %s2148_s5, %s2142_s18 }
  0xb1   : > { %564 = vmatprep.mubr.f32.mxu0 %v2263_v0  ;;  %658 = vmatprep.mubr.f32.mxu1 %v2263_v0  ;;  %v701_v27 = vld [vmem:[#allocation10 + $0x78] sm:$0xff]  ;;  %v700_v28 = vld [vmem:[#allocation10 + $0x70] sm:$0xff]  ;;  %v699_v29 = vld [vmem:[#allocation10 + $0x68] sm:$0xff]  ;;  %p2145_p9 = pneg %p2144_p5 }
  0xb2   : > { %1615 = vmatprep.subr.mxu0 %v2263_v0  ;;  %1649 = vmatpush3.msra.mxu1 %v701_v27  ;;  %v698_v30 = vld [vmem:[#allocation10 + $0x60] sm:$0xff]  ;;  %v697_v31 = vld [vmem:[#allocation10 + $0x58] sm:$0xff]  ;;  %v696_v32 = vld [vmem:[#allocation10 + $0x50] sm:$0xff]  ;;  %p2151_p10 = por %p2150_p3, %p2149_p13 }
  0xb3   : > { %1616 = vmatpush3.msra.mxu0 %v717_v10  ;;  %1650 = vmatprep.subr.mxu1 %v2263_v0  ;;  %v695_v33 = vld [vmem:[#allocation10 + $0x48] sm:$0xff]  ;;  %v694_v34 = vld [vmem:[#allocation10 + $0x40] sm:$0xff]  ;;  %v693_v35 = vld [vmem:[#allocation10 + $0x38] sm:$0xff] }
  0xb4   : > { %1499 = vmatmul.mubr.msk.f32.gmra.mxu0 %vm478_vm0, %v472_v11  ;;  %1502 = vmatmul.mubr.msk.f32.gmra.mxu1 %vm478_vm0, %v475_v12  ;;  %v692_v36 = vld [vmem:[#allocation10 + $0x30] sm:$0xff]  ;;  %v691_v37 = vld [vmem:[#allocation10 + $0x28] sm:$0xff]  ;;  %v690_v38 = vld [vmem:[#allocation10 + $0x20] sm:$0xff]  ;;  %p2152_p7 = pnand %p2151_p10, %p2145_p9 }
  0xb5   : > { %1617 = vmatprep.subr.mxu0 %v2263_v0  ;;  %1645 = vmatprep.mubr.msk.f32.mxu0 %vm2264_vm1, %v2263_v0  ;;  %v689_v39 = vld [vmem:[#allocation10 + $0x18] sm:$0xff]  ;;  %v688_v40 = vld [vmem:[#allocation10 + $0x10] sm:$0xff]  ;;  %v687_v41 = vld [vmem:[#allocation10 + $0x8] sm:$0xff] }
  0xb6   : > { %1618 = vmatpush3.msra.mxu0 %v716_v13  ;;  %1651 = vmatpush3.msra.mxu1 %v700_v28  ;;  %v686_v42 = vld [vmem:[#allocation10] sm:$0xff]  ;;  %v875_v46 = vld [vmem:[#allocation10 + $0x178] sm:$0xff]  ;;  %v874_v50 = vld [vmem:[#allocation10 + $0x170] sm:$0xff] }
  0xb7   : > { %1619 = vmatprep.subr.mxu0 %v2263_v0  ;;  %1652 = vmatprep.subr.mxu1 %v2263_v0  ;;  %v873_v55 = vld [vmem:[#allocation10 + $0x168] sm:$0xff]  ;;  %v872_v60 = vld [vmem:[#allocation10 + $0x160] sm:$0xff]  ;;  %v871_v2 = vld [vmem:[#allocation10 + $0x158] sm:$0xff] }
  0xb8   : > { %1620 = vmatpush3.msra.mxu0 %v715_v14  ;;  %1680 = vmatprep.mubr.msk.f32.mxu1 %vm2264_vm1, %v2263_v0  ;;  %v870_v5 = vld [vmem:[#allocation10 + $0x150] sm:$0xff]  ;;  %v869_v7 = vld [vmem:[#allocation10 + $0x148] sm:$0xff]  ;;  %v868_v8 = vld [vmem:[#allocation10 + $0x140] sm:$0xff] }
  0xb9   : > { %1621 = vmatprep.subr.mxu0 %v2263_v0  ;;  %1653 = vmatpush3.msra.mxu1 %v699_v29  ;;  %v867_v9 = vld [vmem:[#allocation10 + $0x138] sm:$0xff]  ;;  %v866_v10 = vld [vmem:[#allocation10 + $0x130] sm:$0xff]  ;;  %v865_v11 = vld [vmem:[#allocation10 + $0x128] sm:$0xff] }
  0xba   : > { %1622 = vmatpush3.msra.mxu0 %v714_v15  ;;  %1654 = vmatprep.subr.mxu1 %v2263_v0  ;;  %v864_v12 = vld [vmem:[#allocation10 + $0x120] sm:$0xff]  ;;  %v863_v13 = vld [vmem:[#allocation10 + $0x118] sm:$0xff]  ;;  %v862_v14 = vld [vmem:[#allocation10 + $0x110] sm:$0xff] }
  0xbb   : > { %1623 = vmatprep.subr.mxu0 %v2263_v0  ;;  %1655 = vmatpush3.msra.mxu1 %v698_v30  ;;  %v959_v27 = vld [vmem:[#allocation10 + $0x1d8] sm:$0xff]  ;;  %v958_v28 = vld [vmem:[#allocation10 + $0x1d0] sm:$0xff]  ;;  %v957_v29 = vld [vmem:[#allocation10 + $0x1c8] sm:$0xff] }
  0xbc   : > { %1624 = vmatpush3.msra.mxu0 %v713_v16  ;;  %1656 = vmatprep.subr.mxu1 %v2263_v0  ;;  %v861_v16 = vld [vmem:[#allocation10 + $0x108] sm:$0xff]  ;;  %v956_v30 = vld [vmem:[#allocation10 + $0x1c0] sm:$0xff] }
  0xbd   : > { %1625 = vmatprep.subr.mxu0 %v2263_v0  ;;  %1657 = vmatpush3.msra.mxu1 %v697_v31  ;;  %v955_v31 = vld [vmem:[#allocation10 + $0x1b8] sm:$0xff] }
  0xbe   : > { %1626 = vmatpush3.msra.mxu0 %v712_v17  ;;  %1658 = vmatprep.subr.mxu1 %v2263_v0 }
  0xbf   : > { %1627 = vmatprep.subr.mxu0 %v2263_v0  ;;  %1659 = vmatpush3.msra.mxu1 %v696_v32  ;;  %v954_v32 = vld [vmem:[#allocation10 + $0x1b0] sm:$0xff] }
  0xc0   : > { %1628 = vmatpush3.msra.mxu0 %v711_v18  ;;  %1660 = vmatprep.subr.mxu1 %v2263_v0 }
  0xc1   : > { %1629 = vmatprep.subr.mxu0 %v2263_v0  ;;  %1661 = vmatpush3.msra.mxu1 %v695_v33  ;;  %v953_v33 = vld [vmem:[#allocation10 + $0x1a8] sm:$0xff] }
  0xc2   : > { %1630 = vmatpush3.msra.mxu0 %v710_v19  ;;  %1662 = vmatprep.subr.mxu1 %v2263_v0 }
  0xc3   : > { %1631 = vmatprep.subr.mxu0 %v2263_v0  ;;  %1663 = vmatpush3.msra.mxu1 %v694_v34  ;;  %v952_v34 = vld [vmem:[#allocation10 + $0x1a0] sm:$0xff] }
  0xc4   : > { %1632 = vmatpush3.msra.mxu0 %v709_v20  ;;  %1664 = vmatprep.subr.mxu1 %v2263_v0  ;;  %v860_v20 = vld [vmem:[#allocation10 + $0x100] sm:$0xff] }
  0xc5   : > { %1633 = vmatprep.subr.mxu0 %v2263_v0  ;;  %1665 = vmatpush3.msra.mxu1 %v693_v35  ;;  %v951_v35 = vld [vmem:[#allocation10 + $0x198] sm:$0xff] }
  0xc6   : > { %1634 = vmatpush3.msra.mxu0 %v708_v21  ;;  %1666 = vmatprep.subr.mxu1 %v2263_v0  ;;  %v963_v21 = vld [vmem:[#allocation10 + $0x1f8] sm:$0xff] }
  0xc7   : > { %1635 = vmatprep.subr.mxu0 %v2263_v0  ;;  %1667 = vmatpush3.msra.mxu1 %v692_v36  ;;  %v950_v36 = vld [vmem:[#allocation10 + $0x190] sm:$0xff] }
  0xc8   : > { %1636 = vmatpush3.msra.mxu0 %v707_v22  ;;  %1668 = vmatprep.subr.mxu1 %v2263_v0 }
  0xc9   : > { %1637 = vmatprep.subr.mxu0 %v2263_v0  ;;  %1669 = vmatpush3.msra.mxu1 %v691_v37  ;;  %v949_v37 = vld [vmem:[#allocation10 + $0x188] sm:$0xff] }
  0xca   : > { %1638 = vmatpush3.msra.mxu0 %v706_v23  ;;  %1670 = vmatprep.subr.mxu1 %v2263_v0 }
  0xcb   : > { %1639 = vmatprep.subr.mxu0 %v2263_v0  ;;  %1671 = vmatpush3.msra.mxu1 %v690_v38  ;;  %v948_v38 = vld [vmem:[#allocation10 + $0x180] sm:$0xff] }
  0xcc   : > { %1640 = vmatpush3.msra.mxu0 %v705_v24  ;;  %1672 = vmatprep.subr.mxu1 %v2263_v0  ;;  %v962_v24 = vld [vmem:[#allocation10 + $0x1f0] sm:$0xff] }
  0xcd   : > { %1641 = vmatprep.subr.mxu0 %v2263_v0  ;;  %1673 = vmatpush3.msra.mxu1 %v689_v39 }
  0xce   : > { %1642 = vmatpush3.msra.mxu0 %v704_v25  ;;  %1674 = vmatprep.subr.mxu1 %v2263_v0  ;;  %v961_v25 = vld [vmem:[#allocation10 + $0x1e8] sm:$0xff] }
  0xcf   : > { %1643 = vmatprep.subr.mxu0 %v2263_v0  ;;  %1675 = vmatpush3.msra.mxu1 %v688_v40  ;;  %v1050_v40 = vld [vmem:[#allocation11 + $0x78] sm:$0xff] }
  0xd0   : > { %1644 = vmatpush3.msra.mxu0 %v703_v26  ;;  %1676 = vmatprep.subr.mxu1 %v2263_v0  ;;  %v960_v26 = vld [vmem:[#allocation10 + $0x1e0] sm:$0xff] }
  0xd1   : > { %1683 = vmatprep.subr.mxu0 %v2263_v0  ;;  %1677 = vmatpush3.msra.mxu1 %v687_v41  ;;  %v1049_v41 = vld [vmem:[#allocation11 + $0x70] sm:$0xff] }
  0xd2   : > { %1678 = vmatprep.subr.mxu1 %v2263_v0 }
  0xd3   : > { %1679 = vmatpush3.msra.mxu1 %v686_v42  ;;  %v1048_v42 = vld [vmem:[#allocation11 + $0x68] sm:$0xff] }
  0xd4   : > { %1718 = vmatprep.subr.mxu1 %v2263_v0 }
 0x16c   : > { %v554_v43 = vpop.f32.mrf.mxu0  ;;  %v648_v44 = vpop.f32.mrf.mxu1 }
 0x16d   : > { %v665_v45 = vsub.f32 %v554_v43, %v648_v44  ;;  %v668_v53 = vadd.f32 %v648_v44, %v554_v43  ;;  %v1047_v43 = vld [vmem:[#allocation11 + $0x60] sm:$0xff]  ;;  %v1046_v44 = vld [vmem:[#allocation11 + $0x58] sm:$0xff] }
 0x16e   : > { %v556_v47 = vpop.f32.mrf.mxu0  ;;  %v650_v48 = vpop.f32.mrf.mxu1 }
 0x16f   : > { %v2624_v49 = vadd.f32 %v650_v48, %v556_v47  ;;  %1646 = vmatmul.mubr.f32.vlgmr.msra.gmra.mxu0 %v665_v45  ;;  %v674_v63 = vmul.f32 %v668_v53, %v668_v53  ;;  %v1045_v45 = vld [vmem:[#allocation11 + $0x50] sm:$0xff]  ;;  %v1043_v47 = vld [vmem:[#allocation11 + $0x40] sm:$0xff]  ;;  %v1042_v48 = vld [vmem:[#allocation11 + $0x38] sm:$0xff] }
 0x170   : > { %1684 = vmatpush3.msra.mxu0 %v875_v46  ;;  %v2626_v51 = vpop.f32.mrf.mxu0  ;;  %v2628_v52 = vpop.f32.mrf.mxu1  ;;  %1715 = vmatprep.mubr.msk.f32.mxu0 %vm2264_vm1, %v2263_v0  ;;  %v1044_v46 = vld [vmem:[#allocation11 + $0x48] sm:$0xff]  ;;  %v1038_v53 = vld [vmem:[#allocation11 + $0x18] sm:$0xff] }
 0x171   : > { %v669_v54 = vadd.f32 %v2628_v52, %v2626_v51  ;;  %1685 = vmatprep.subr.mxu0 %v2263_v0  ;;  %v666_v23 = vsub.f32 %v2626_v51, %v2628_v52  ;;  %v1040_v51 = vld [vmem:[#allocation11 + $0x28] sm:$0xff]  ;;  %v1039_v52 = vld [vmem:[#allocation11 + $0x20] sm:$0xff] }
 0x172   : > { %1686 = vmatpush3.msra.mxu0 %v874_v50  ;;  %v562_v56 = vpop.f32.mrf.mxu0  ;;  %v656_v57 = vpop.f32.mrf.mxu1  ;;  %v1041_v50 = vld [vmem:[#allocation11 + $0x30] sm:$0xff] }
 0x173   : > { %v675_v58 = vmul.f32 %v669_v54, %v669_v54  ;;  %v2635_v59 = vadd.f32 %v656_v57, %v562_v56  ;;  %1687 = vmatprep.subr.mxu0 %v2263_v0  ;;  %v1037_v54 = vld [vmem:[#allocation11 + $0x10] sm:$0xff]  ;;  %v1035_v56 = vld [vmem:[#allocation11] sm:$0xff] }
 0x174   : > { %1688 = vmatpush3.msra.mxu0 %v873_v55  ;;  %v2638_v61 = vpop.f32.mrf.mxu0  ;;  %v2640_v62 = vpop.f32.mrf.mxu1  ;;  %v1036_v55 = vld [vmem:[#allocation11 + $0x8] sm:$0xff] }
 0x175   : > { %v670_v1 = vadd.f32 %v2640_v62, %v2638_v61  ;;  %1689 = vmatprep.subr.mxu0 %v2263_v0  ;;  %v676_v3 = vadd.f32 %v675_v58, %v674_v63  ;;  %v667_v39 = vsub.f32 %v2638_v61, %v2640_v62 }
 0x176   : > { %1690 = vmatpush3.msra.mxu0 %v872_v60  ;;  %v2699_v57 = vpop.f32.mrf.mxu0  ;;  %v2701_v61 = vpop.f32.mrf.mxu1 }
 0x177   : > { %v677_v4 = vmul.f32 %v670_v1, %v670_v1  ;;  %1691 = vmatprep.subr.mxu0 %v2263_v0 }
 0x178   : > { %1692 = vmatpush3.msra.mxu0 %v871_v2 }
 0x179   : > { %v678_v6 = vadd.f32 %v677_v4, %v676_v3  ;;  %1693 = vmatprep.subr.mxu0 %v2263_v0 }
 0x17a   : > { %1694 = vmatpush3.msra.mxu0 %v870_v5 }
 0x17b   : > { %1948 = vrsqrt.f32 %v678_v6  ;;  %1695 = vmatprep.subr.mxu0 %v2263_v0  ;;  %vm681_vm2 = vcmp.eq.f32.partialorder %v678_v6, inf  ;;  %v684_v18 = vand.u32 2147483648, %v678_v6  ;;  %vm683_vm3 = vcmp.eq.f32.partialorder %v678_v6, 0.0 }
 0x17c   : > { %1696 = vmatpush3.msra.mxu0 %v869_v7 }
 0x17d   : > { %1697 = vmatprep.subr.mxu0 %v2263_v0 }
 0x17e   : > { %1698 = vmatpush3.msra.mxu0 %v868_v8 }
 0x17f   : > { %1699 = vmatprep.subr.mxu0 %v2263_v0 }
 0x180   : > { %1700 = vmatpush3.msra.mxu0 %v867_v9 }
 0x181   : > { %1701 = vmatprep.subr.mxu0 %v2263_v0 }
 0x182   : > { %1702 = vmatpush3.msra.mxu0 %v866_v10  ;;  %v1163_v10 = vld [vmem:[#allocation13 + $0x78] sm:$0xff] }
 0x183   : > { %1703 = vmatprep.subr.mxu0 %v2263_v0 }
 0x184   : > { %1704 = vmatpush3.msra.mxu0 %v865_v11  ;;  %v1162_v11 = vld [vmem:[#allocation13 + $0x70] sm:$0xff] }
 0x185   : > { %1705 = vmatprep.subr.mxu0 %v2263_v0 }
 0x186   : > { %1706 = vmatpush3.msra.mxu0 %v864_v12  ;;  %v1161_v12 = vld [vmem:[#allocation13 + $0x68] sm:$0xff] }
 0x187   : > { %1707 = vmatprep.subr.mxu0 %v2263_v0 }
 0x188   : > { %v1949_v15 = vpop.eup %1948  ;;  %1708 = vmatpush3.msra.mxu0 %v863_v13  ;;  %v1160_v13 = vld [vmem:[#allocation13 + $0x60] sm:$0xff] }
 0x189   : > { %1709 = vmatprep.subr.mxu0 %v2263_v0  ;;  %v680_v17 = vmul.f32 %v1949_v15, %v678_v6  ;;  %v1158_v15 = vld [vmem:[#allocation13 + $0x50] sm:$0xff] }
 0x18a   : > { %1710 = vmatpush3.msra.mxu0 %v862_v14  ;;  %v1159_v14 = vld [vmem:[#allocation13 + $0x58] sm:$0xff] }
 0x18b   : > { %1711 = vmatprep.subr.mxu0 %v2263_v0  ;;  %v682_v19 = vsel %vm681_vm2, %v678_v6, %v680_v17  ;;  %v1156_v17 = vld [vmem:[#allocation13 + $0x40] sm:$0xff] }
 0x18c   : > { %1712 = vmatpush3.msra.mxu0 %v861_v16  ;;  %v685_v22 = vsel %vm683_vm3, %v684_v18, %v682_v19  ;;  %v1157_v16 = vld [vmem:[#allocation13 + $0x48] sm:$0xff]  ;;  %v1155_v18 = vld [vmem:[#allocation13 + $0x38] sm:$0xff]  ;;  %v1154_v19 = vld [vmem:[#allocation13 + $0x30] sm:$0xff] }
 0x18d   : > { %1713 = vmatprep.subr.mxu0 %v2263_v0  ;;  %1681 = vmatmul.mubr.f32.vlgmr.msra.gmra.mxu1 %v685_v22  ;;  %v1151_v22 = vld [vmem:[#allocation13 + $0x18] sm:$0xff] }
 0x18e   : > { %1714 = vmatpush3.msra.mxu0 %v860_v20  ;;  %1719 = vmatpush3.msra.mxu1 %v963_v21  ;;  %v1153_v20 = vld [vmem:[#allocation13 + $0x28] sm:$0xff]  ;;  %v1152_v21 = vld [vmem:[#allocation13 + $0x20] sm:$0xff] }
 0x18f   : > { %1716 = vmatmul.mubr.f32.vlgmr.msra.gmra.mxu0 %v666_v23  ;;  %1720 = vmatprep.subr.mxu1 %v2263_v0  ;;  %v1150_v23 = vld [vmem:[#allocation13 + $0x10] sm:$0xff] }
 0x190   : > { %1721 = vmatpush3.msra.mxu1 %v962_v24  ;;  %1750 = vmatprep.mubr.msk.f32.mxu1 %vm2264_vm1, %v2263_v0  ;;  %v1149_v24 = vld [vmem:[#allocation13 + $0x8] sm:$0xff] }
 0x191   : > { %1722 = vmatprep.subr.mxu1 %v2263_v0  ;;  %1753 = vmatprep.subr.mxu0 %v2263_v0 }
 0x192   : > { %1723 = vmatpush3.msra.mxu1 %v961_v25  ;;  %1785 = vmatprep.mubr.msk.f32.mxu0 %vm2264_vm1, %v2263_v0  ;;  %v1148_v25 = vld [vmem:[#allocation13] sm:$0xff] }
 0x193   : > { %1724 = vmatprep.subr.mxu1 %v2263_v0  ;;  %1754 = vmatpush3.msra.mxu0 %v1050_v40 }
 0x194   : > { %1725 = vmatpush3.msra.mxu1 %v960_v26  ;;  %1755 = vmatprep.subr.mxu0 %v2263_v0  ;;  %v1503_v26 = vld [vmem:[%s2822_s6] ss:$0 sm:$0xff] }
 0x195   : > { %1726 = vmatprep.subr.mxu1 %v2263_v0  ;;  %1756 = vmatpush3.msra.mxu0 %v1049_v41 }
 0x196   : > { %1727 = vmatpush3.msra.mxu1 %v959_v27  ;;  %1757 = vmatprep.subr.mxu0 %v2263_v0 }
 0x197   : > { %1728 = vmatprep.subr.mxu1 %v2263_v0  ;;  %1758 = vmatpush3.msra.mxu0 %v1048_v42 }
 0x198   : > { %1729 = vmatpush3.msra.mxu1 %v958_v28  ;;  %1759 = vmatprep.subr.mxu0 %v2263_v0 }
 0x199   : > { %1730 = vmatprep.subr.mxu1 %v2263_v0  ;;  %1760 = vmatpush3.msra.mxu0 %v1047_v43 }
 0x19a   : > { %1731 = vmatpush3.msra.mxu1 %v957_v29  ;;  %1761 = vmatprep.subr.mxu0 %v2263_v0 }
 0x19b   : > { %1732 = vmatprep.subr.mxu1 %v2263_v0  ;;  %1762 = vmatpush3.msra.mxu0 %v1046_v44 }
 0x19c   : > { %1733 = vmatpush3.msra.mxu1 %v956_v30  ;;  %1763 = vmatprep.subr.mxu0 %v2263_v0 }
 0x19d   : > { %1734 = vmatprep.subr.mxu1 %v2263_v0  ;;  %1764 = vmatpush3.msra.mxu0 %v1045_v45 }
 0x19e   : > { %1735 = vmatpush3.msra.mxu1 %v955_v31  ;;  %1765 = vmatprep.subr.mxu0 %v2263_v0 }
 0x19f   : > { %1736 = vmatprep.subr.mxu1 %v2263_v0  ;;  %1766 = vmatpush3.msra.mxu0 %v1044_v46 }
 0x1a0   : > { %1737 = vmatpush3.msra.mxu1 %v954_v32  ;;  %1767 = vmatprep.subr.mxu0 %v2263_v0 }
 0x1a1   : > { %1738 = vmatprep.subr.mxu1 %v2263_v0  ;;  %1768 = vmatpush3.msra.mxu0 %v1043_v47 }
 0x1a2   : > { %1739 = vmatpush3.msra.mxu1 %v953_v33  ;;  %1769 = vmatprep.subr.mxu0 %v2263_v0 }
 0x1a3   : > { %1740 = vmatprep.subr.mxu1 %v2263_v0  ;;  %1770 = vmatpush3.msra.mxu0 %v1042_v48 }
 0x1a4   : > { %1741 = vmatpush3.msra.mxu1 %v952_v34  ;;  %1771 = vmatprep.subr.mxu0 %v2263_v0 }
 0x1a5   : > { %1742 = vmatprep.subr.mxu1 %v2263_v0  ;;  %1772 = vmatpush3.msra.mxu0 %v1041_v50  ;;  %v673_v50 = vadd.f32 %v2701_v61, %v2699_v57 }
 0x1a6   : > { %1743 = vmatpush3.msra.mxu1 %v951_v35  ;;  %1773 = vmatprep.subr.mxu0 %v2263_v0 }
 0x1a7   : > { %1744 = vmatprep.subr.mxu1 %v2263_v0  ;;  %1774 = vmatpush3.msra.mxu0 %v1040_v51 }
 0x1a8   : > { %1745 = vmatpush3.msra.mxu1 %v950_v36  ;;  %1775 = vmatprep.subr.mxu0 %v2263_v0 }
 0x1a9   : > { %1746 = vmatprep.subr.mxu1 %v2263_v0  ;;  %1776 = vmatpush3.msra.mxu0 %v1039_v52 }
 0x1aa   : > { %1747 = vmatpush3.msra.mxu1 %v949_v37  ;;  %1777 = vmatprep.subr.mxu0 %v2263_v0 }
 0x1ab   : > { %1748 = vmatprep.subr.mxu1 %v2263_v0  ;;  %1778 = vmatpush3.msra.mxu0 %v1038_v53 }
 0x1ac   : > { %1749 = vmatpush3.msra.mxu1 %v948_v38  ;;  %1779 = vmatprep.subr.mxu0 %v2263_v0 }
 0x1ad   : > { %1751 = vmatmul.mubr.f32.vlgmr.msra.gmra.mxu1 %v667_v39  ;;  %1788 = vmatprep.subr.mxu1 %v2263_v0 }
 0x1ae   : > { %1820 = vmatprep.mubr.msk.f32.mxu1 %vm2264_vm1, %v2263_v0  ;;  %1780 = vmatpush3.msra.mxu0 %v1037_v54 }
 0x1af   : > { %1781 = vmatprep.subr.mxu0 %v2263_v0  ;;  %1789 = vmatpush3.msra.mxu1 %v1163_v10 }
 0x1b0   : > { %1782 = vmatpush3.msra.mxu0 %v1036_v55  ;;  %1790 = vmatprep.subr.mxu1 %v2263_v0 }
 0x1b1   : > { %1783 = vmatprep.subr.mxu0 %v2263_v0  ;;  %1791 = vmatpush3.msra.mxu1 %v1162_v11 }
 0x1b2   : > { %1784 = vmatpush3.msra.mxu0 %v1035_v56  ;;  %1792 = vmatprep.subr.mxu1 %v2263_v0 }
 0x1b3   : > { %1793 = vmatpush3.msra.mxu1 %v1161_v12 }
 0x1b4   : > { %1794 = vmatprep.subr.mxu1 %v2263_v0 }
 0x1b5   : > { %1795 = vmatpush3.msra.mxu1 %v1160_v13 }
 0x1b6   : > { %1796 = vmatprep.subr.mxu1 %v2263_v0 }
 0x1b7   : > { %1797 = vmatpush3.msra.mxu1 %v1159_v14 }
 0x1b8   : > { %1798 = vmatprep.subr.mxu1 %v2263_v0 }
 0x1b9   : > { %1799 = vmatpush3.msra.mxu1 %v1158_v15 }
 0x1ba   : > { %1800 = vmatprep.subr.mxu1 %v2263_v0 }
 0x1bb   : > { %1801 = vmatpush3.msra.mxu1 %v1157_v16 }
 0x1bc   : > { %1802 = vmatprep.subr.mxu1 %v2263_v0 }
 0x1bd   : > { %1803 = vmatpush3.msra.mxu1 %v1156_v17 }
 0x1be   : > { %1804 = vmatprep.subr.mxu1 %v2263_v0 }
 0x1bf   : > { %1805 = vmatpush3.msra.mxu1 %v1155_v18 }
 0x1c0   : > { %1806 = vmatprep.subr.mxu1 %v2263_v0 }
 0x1c1   : > { %1807 = vmatpush3.msra.mxu1 %v1154_v19 }
 0x1c2   : > { %1808 = vmatprep.subr.mxu1 %v2263_v0 }
 0x1c3   : > { %1809 = vmatpush3.msra.mxu1 %v1153_v20 }
 0x1c4   : > { %1810 = vmatprep.subr.mxu1 %v2263_v0 }
 0x1c5   : > { %1811 = vmatpush3.msra.mxu1 %v1152_v21 }
 0x1c6   : > { %1812 = vmatprep.subr.mxu1 %v2263_v0 }
 0x1c7   : > { %1813 = vmatpush3.msra.mxu1 %v1151_v22 }
 0x1c8   : > { %1814 = vmatprep.subr.mxu1 %v2263_v0 }
 0x1c9   : > { %1815 = vmatpush3.msra.mxu1 %v1150_v23 }
 0x1ca   : > { %1816 = vmatprep.subr.mxu1 %v2263_v0 }
 0x1cb   : > { %1817 = vmatpush3.msra.mxu1 %v1149_v24 }
 0x1cc   : > { %1818 = vmatprep.subr.mxu1 %v2263_v0 }
 0x1cd   : > { %1819 = vmatpush3.msra.mxu1 %v1148_v25 }
 0x22f   : > { %v785_v58 = vpop.f32.mrf.mxu0 }
 0x231   : > { %v1647_v60 = vpop.f32.mrf.mxu0 }
 0x24d   : > { %v855_v62 = vpop.f32.mrf.mxu1 }
 0x24e   : > { %v856_v3 = vadd.f32 %v855_v62, %v785_v58 }
 0x24f   : > { %v942_v63 = vpop.f32.mrf.mxu0  ;;  %v1682_v1 = vpop.f32.mrf.mxu1 }
 0x250   : > { %v946_v4 = vadd.f32 %v942_v63, %v856_v3 }
 0x251   : > { %v1717_v2 = vpop.f32.mrf.mxu0 }
 0x26d   : > { %v1030_v5 = vpop.f32.mrf.mxu1 }
 0x26e   : > { %v1034_v6 = vadd.f32 %v1030_v5, %v946_v4 }
 0x26f   : > { %v1752_v7 = vpop.f32.mrf.mxu1 }
 0x270   : > { %vm1269_vm4 = vcmp.ge.f32.partialorder %v1034_v6, 0.0  ;;  %v1270_v8 = vmul.f32 0.01, %v1034_v6  ;;  %1786 = vmatmul.mubr.f32.vlgmr.msra.gmra.mxu0 %v1034_v6 }
 0x272   : > { %v1271_v9 = vsel %vm1269_vm4, %v1034_v6, %v1270_v8 }
 0x273   : > { %1272 = vst [vmem:[%s2704_s4] sm:$0xff] %v1271_v9 }
 0x330   : > { %v1124_v27 = vpop.f32.mrf.mxu0 }
 0x331   : > { %v1125_v28 = vadd.f32 %v1503_v26, %v1124_v27 }
 0x332   : > { %v1787_v29 = vpop.f32.mrf.mxu0 }
 0x333   : > { %v1128_v30 = vrot.slane %v1125_v28, 4 }
 0x335   : > { %v1129_v31 = vmax.f32 %v1125_v28, %v1128_v30 }
 0x337   : > { %v1130_v32 = vrot.slane %v1129_v31, 2 }
 0x339   : > { %v1131_v33 = vmax.f32 %v1129_v31, %v1130_v32 }
 0x33b   : > { %v1132_v34 = vrot.slane %v1131_v33, 1 }
 0x33d   : > { %v1133_v35 = vmax.f32 %v1131_v33, %v1132_v34 }
 0x33f   : > { %v1134_v36 = vsub.f32 %v1125_v28, %v1133_v35 }
 0x341   : > { %v1135_v37 = vmul.f32 1.442695, %v1134_v36 }
 0x343   : > { %1950 = vpow2.f32 %v1135_v37 }
 0x350   : > { %v1951_v38 = vpop.eup %1950 }
 0x351   : > { %v1137_v39 = vrot.slane %v1951_v38, 4 }
 0x353   : > { %v1138_v40 = vadd.f32 %v1951_v38, %v1137_v39 }
 0x355   : > { %v1139_v41 = vrot.slane %v1138_v40, 2 }
 0x357   : > { %v1140_v42 = vadd.f32 %v1139_v41, %v1138_v40 }
 0x359   : > { %v1141_v43 = vrot.slane %v1140_v42, 1 }
 0x35b   : > { %v1142_v44 = vadd.f32 %v1141_v43, %v1140_v42 }
 0x35d   : > { %1952 = vrcp.f32 %v1142_v44 }
 0x36a   : > { %v1953_v45 = vpop.eup %1952 }
 0x36b   : > { %v1144_v46 = vmul.f32 %v1953_v45, %v1951_v38 }
 0x36d   : > { %v2726_v47 = vmul.f32 %v1144_v46, %v2624_v49  ;;  %v2732_v48 = vmul.f32 %v1144_v46, %v2635_v59  ;;  %v2739_v51 = vmul.f32 %v1144_v46, %v673_v50 }
 0x36f   : > { %1821 = vmatmul.mubr.f32.vlgmr.msra.gmra.mxu1 %v2726_v47 }
 0x370   : > { %1823 = vmatprep.mubr.msk.f32.mxu1 %vm2264_vm1, %v2263_v0 }
 0x373   : > { %1824 = vmatmul.mubr.f32.gmra.mxu1 %v2732_v48 }
 0x374   : > { %1826 = vmatprep.mubr.msk.f32.mxu1 %vm2264_vm1, %v2263_v0 }
 0x377   : > { %1827 = vmatmul.mubr.f32.gmra.mxu1 %v2739_v51 }
 0x378   : > { %2155 = shalt.err (!%p2152_p7)
}
 0x379   : > { %s2156_s16 = scalar_lea.hbm %s1306_s0, 128  ;;  %s2160_s4 = scalar_lea.hbm %s2825_s9, 256 }
 0x37a   : > { %p2157_p0 = scmp.ne.s32.totalorder %s1306_s0, %s2156_s16  ;;  %p2161_p12 = scmp.lt.s32.totalorder %s1306_s0, %s2825_s9 }
 0x37b   : > { %p2162_p1 = scmp.lt.s32.totalorder %s2160_s4, %s2156_s16 }
 0x37c   : > { %p2158_p8 = pnand %p2157_p0, %p2865_p2 }
 0x37d   : > { %p2163_p4 = por %p2162_p1, %p2161_p12 }
 0x37e   : > { %p2159_p11 = pneg %p2158_p8 }
 0x380   : > { %p2164_p6 = pnand %p2163_p4, %p2159_p11 }
 0x382   : > { %2167 = shalt.err (!%p2164_p6)
}
 0x383   : > { %1860 = dma.vmem_to_hbm [thread:$0]  (%p2865_p2), %s1309_s27, 128, %s1306_s0, %s1279_s26  }
 0x384   : > { %s462_s20 = scalar_lea.vmem [#allocation14], %s2538_s2  ;;  %s1834_s17 = smul.u32 384, %s2340_s15 }
 0x385   : > { %s1292_s29 = sshll.u32 %s462_s20, 4  ;;  %s1274_s15 = scalar_lea.sflag [#allocation4], %s2535_s7  ;;  %s2765_s29 = int_to_ptr.vmem [resolvable:$true] %s1292_s29 }
 0x386   : > { %s2770_s26 = scalar_lea.hbm %s2824_s8, %s1834_s17  ;;  %s2168_s2 = scalar_lea.vmem %s2765_s29, 384 }
 0x387   : > { %p2169_p5 = scmp.ne.s32.totalorder %s2765_s29, %s2168_s2  ;;  %s2266_s18 = smov [#allocation14]  }
 0x388   : > { %s2172_s14 = sshll.u32 %s2266_s18, 4  ;;  %s2173_s14 = int_to_ptr.vmem [resolvable:$false] %s2172_s14 }
 0x389   : > { %p2170_p9 = pnand %p2169_p5, %p2865_p2  ;;  %s2174_s28 = scalar_lea.vmem %s2173_s14, 768 }
 0x38a   : > { %p2175_p3 = scmp.lt.s32.totalorder %s2765_s29, %s2173_s14  ;;  %p2176_p10 = scmp.lt.s32.totalorder %s2174_s28, %s2168_s2 }
 0x38b   : > { %p2171_p13 = pneg %p2170_p9 }
 0x38c   : > { %p2177_p7 = por %p2176_p10, %p2175_p3 }
 0x38e   : > { %p2178_p0 = pnand %p2177_p7, %p2171_p13 }
 0x42f   : > { %v1230_v0 = vpop.f32.mrf.mxu1 }
 0x430   : > { %v1249_v54 = vmul.f32 %v1230_v0, %v1230_v0  ;;  %v1244_v63 = vmul.f32 %v1230_v0, %v2726_v47 }
 0x431   : > { %v1822_v49 = vpop.f32.mrf.mxu1 }
 0x433   : > { %v1235_v59 = vpop.f32.mrf.mxu1 }
 0x434   : > { %v1250_v52 = vmul.f32 %v1235_v59, %v1235_v59  ;;  %v1245_v62 = vmul.f32 %v1235_v59, %v2732_v48 }
 0x435   : > { %v1825_v53 = vpop.f32.mrf.mxu1 }
 0x436   : > { %v1252_v56 = vadd.f32 %v1250_v52, %v1249_v54  ;;  %v1247_v2 = vadd.f32 %v1245_v62, %v1244_v63 }
 0x437   : > { %v1240_v55 = vpop.f32.mrf.mxu1 }
 0x438   : > { %v1251_v57 = vmul.f32 %v1240_v55, %v1240_v55  ;;  %v1246_v1 = vmul.f32 %v1240_v55, %v2739_v51 }
 0x439   : > { %v1828_v58 = vpop.f32.mrf.mxu1 }
 0x43a   : > { %v1253_v60 = vadd.f32 %v1252_v56, %v1251_v57  ;;  %v1248_v3 = vadd.f32 %v1247_v2, %v1246_v1 }
 0x43c   : > { %v1254_v61 = vadd.f32 1e-06, %v1253_v60  ;;  %vm1257_vm5 = vcmp.lt.f32.partialorder %v1248_v3, 0.0 }
 0x43e   : > { %1954 = vrcp.f32 %v1254_v61 }
 0x44b   : > { %v1955_v4 = vpop.eup %1954 }
 0x44c   : > { %v1256_v5 = vmul.f32 %v1955_v4, %v1248_v3 }
 0x44e   : > { %v1258_v6 = vmul.f32 0.99, %v1256_v5 }
 0x450   : > { %v1259_v7 = vsel %vm1257_vm5, %v1258_v6, 0.0 }
 0x451   : > { %v1260_v8 = vmul.f32 %v1259_v7, %v1230_v0  ;;  %v1261_v9 = vmul.f32 %v1259_v7, %v1235_v59  ;;  %v1262_v10 = vmul.f32 %v1259_v7, %v1240_v55 }
 0x453   : > { %v1263_v11 = vsub.f32 %v2726_v47, %v1260_v8  ;;  %v1264_v12 = vsub.f32 %v2732_v48, %v1261_v9  ;;  %v1265_v13 = vsub.f32 %v2739_v51, %v1262_v10 }
 0x455   : > { %1266 = vst [vmem:[%s462_s20] sm:$0xff] %v1263_v11  ;;  %1267 = vst [vmem:[%s462_s20 + $0x8] sm:$0xff] %v1264_v12 }
 0x456   : > { %1268 = vst [vmem:[%s462_s20 + $0x10] sm:$0xff] %v1265_v13 }
 0x457   : > { %2181 = shalt.err (!%p2178_p0)
}
 0x458   : > { %s2182_s5 = scalar_lea.hbm %s2770_s26, 384  ;;  %s2186_s24 = scalar_lea.hbm %s2824_s8, 768 }
 0x459   : > { %p2183_p8 = scmp.ne.s32.totalorder %s2770_s26, %s2182_s5  ;;  %p2187_p1 = scmp.lt.s32.totalorder %s2770_s26, %s2824_s8 }
 0x45a   : > { %p2188_p4 = scmp.lt.s32.totalorder %s2186_s24, %s2182_s5 }
 0x45b   : > { %p2184_p11 = pnand %p2183_p8, %p2865_p2 }
 0x45c   : > { %p2189_p6 = por %p2188_p4, %p2187_p1 }
 0x45d   : > { %p2185_p12 = pneg %p2184_p11 }
 0x45f   : > { %p2190_p5 = pnand %p2189_p6, %p2185_p12 }
 0x461   : > { %2193 = shalt.err (!%p2190_p5)
}
 0x462   : > { %s2267_s19 = smov 128   ;;  %s2268_s20 = smov 8  }
 0x463   : > { %1859 = dma.vmem_to_hbm [thread:$0]  (%p2865_p2), %s2765_s29, 384, %s2770_s26, %s1274_s15, %s2267_s19, %s2267_s19, %s2268_s20  }
 0x464 PF: > { %s1320_s17 = sand.u32 1, %s2240_s30   ;;  %p2866_p9 = scmp.ne.s32.totalorder %s2851_s21, 0 }
 0x465   : > { %p2867_p13 = scmp.ge.s32.totalorder %s2252_s12, 2  ;;  %s1321_s0 = scalar_lea.sflag [#allocation4], %s1320_s17 }
 0x467   : > { %p1887_p3 = pnand %p2867_p13, %p2866_p9 }
 0x469   : > { %p1888_p10 = pneg %p1887_p3 }
 0x46b   : > { %2231 = dma.done.wait (%p1888_p10), %s1321_s0, 384  }
 0x46c   : > { %2233 = vsyncadd (%p1888_p10), %s1321_s0, 4294966912  ;;  %s1330_s27 = scalar_lea.sflag [#allocation16], %s1320_s17 }
 0x46d   : > { %2235 = dma.done.wait (%p1888_p10), %s1330_s27, 128  }
 0x46e   : > { %2237 = vsyncadd (%p1888_p10), %s1330_s27, 4294967168  ;;  %p31_p2 = scmp.ge.s32.totalorder %s2417_s22, 4   ;;  %s2868_s30 = smov %s2244_s10 }
 0x46f   : > { %s2869_s10 = smov %s2248_s11  ;;  %s2870_s11 = smov %s2429_s23 }
 0x470   : > { %s2871_s12 = smov %s2417_s22  ;;  %33 = sbr.rel (!%p31_p2) target bundleno = 18 (0x12), region = 150 }
 0x475   :  { %1335 = vsyncpa [#allocation3], 1 }
 0x476   :  { %1337 = vsyncpa [#allocation3 + $0x1], 1 }
 0x477   :  { %1338 = vsyncpa [#allocation6], 1 }
 0x478   :  { %1340 = vsyncpa [#allocation6 + $0x1], 1 }
 0x479   :  { %1341 = vsyncpa [#allocation9], 1 }
 0x47a   :  { %1342 = vsyncpa [#allocation12], 1 }
 0x47b   :  { %1343 = vsyncpa [#allocation4], 1 }
 0x47c   :  { %1345 = vsyncpa [#allocation4 + $0x1], 1 }
 0x47d   :  { %1346 = vsyncpa [#allocation16], 1 }
 0x47e   :  { %1348 = vsyncpa [#allocation16 + $0x1], 1 }

</bundles_post_ra>
